<compile_context>
chip_gen: v5e
topology: v5e:2x2
jax: 0.10.0
libtpu: 0.0.40
codegen_flags: <defaults>
</compile_context>

<pallas_src>
import functools

import jax
import jax.numpy as jnp
from jax import lax
from jax.experimental import pallas as pl
from jax.experimental.pallas import tpu as pltpu

KS = 3            # kernel_size
PAD = KS // 2     # padding = 1 ("same" for stride 1)
BN_EPS = 1e-5
LANE = 128        # TPU lane width


def _round_up(x, m):
    return (x + m - 1) // m * m


def _pick_h_tile(H, W, Wp, cin_p, cout_p, in_itemsize, budget_bytes=16 << 20):
    """Largest divisor of H whose per-tile VMEM footprint fits the budget."""
    for th in range(H, 0, -1):
        if H % th:
            continue
        per_tile = (2 * (th + 2 * PAD) * Wp * cin_p * in_itemsize   # dbl-buffered input
                    + 2 * th * W * cout_p * 4                       # dbl-buffered output (f32)
                    + th * W * KS * KS * cin_p * in_itemsize        # im2col scratch
                    + 2 * th * W * cout_p * 4)                      # f32 matmul acc / epilogue
        if per_tile <= budget_bytes:
            return th
    return 1


def _convblock_kernel(x_ref, w_ref, sb_ref, o_ref, col_ref):
    """conv3x3("same") -> folded BN -> ReLU for one (batch, H-tile) block.

    x_ref   : (TH+2, W+2, Cin_p)       halo'd NHWC input slab (compute_dtype)
    w_ref   : (KS*KS*Cin_p, Cout_p)    weights, row = (kh*KS + kw)*Cin_p + cin
    sb_ref  : (2, Cout_p)              row 0 = folded BN scale, row 1 = folded bias (f32)
    o_ref   : (TH*W, Cout_p)           output slab (flattened spatial)
    col_ref : (TH, W, KS*KS*Cin_p)     im2col staging scratch (compute_dtype)
    """
    thp, wp, cin = x_ref.shape
    th, w = thp - 2 * PAD, wp - 2 * PAD

    # Stage the 9 taps into the im2col scratch (lane-aligned stores, one tap live at
    # a time -- no materialized tap pile-up).
    for t in range(KS * KS):
        kh, kw = divmod(t, KS)
        col_ref[:, :, t * cin:(t + 1) * cin] = x_ref[kh:kh + th, kw:kw + w, :]

    # One MXU matmul over the full 9*Cin_p contraction, f32 accumulation.
    acc = jnp.dot(col_ref[...].reshape(th * w, KS * KS * cin), w_ref[...],
                  preferred_element_type=jnp.float32)

    # Folded BN + ReLU on the VPU in f32 (v5e has no bf16 VALU).
    sb = sb_ref[...]
    o_ref[...] = jnp.maximum(acc * sb[0:1, :] + sb[1:2, :], 0.0).astype(o_ref.dtype)


@functools.partial(jax.jit, static_argnames=("compute_dtype",))
def conv_block_pallas(x_nchw, w9, sb, *, compute_dtype=jnp.float32):
    """ConvBlock forward. x_nchw: (N, Cin, H, W) f32 -> (N, Cout, H, W) f32.

    w9 : (KS*KS, Cin, Cout) conv weights (tap-major), sb : (2, Cout) folded BN.
    """
    N, Cin, H, W = x_nchw.shape
    Cout = w9.shape[-1]
    cin_p = _round_up(Cin, LANE)
    cout_p = _round_up(Cout, LANE)
    Wp = W + 2 * PAD
    in_sz = jnp.dtype(compute_dtype).itemsize

    # ---- weights / BN: pad channels to lane multiples, cast, flatten tap-major ----
    w_p = (jnp.zeros((KS * KS, cin_p, cout_p), compute_dtype)
           .at[:, :Cin, :Cout].set(w9.astype(compute_dtype))
           .reshape(KS * KS * cin_p, cout_p))
    sb_p = jnp.zeros((2, cout_p), jnp.float32).at[:, :Cout].set(sb)

    # ---- input: NCHW -> NHWC, channel pad + 1-pixel spatial halo pad, pre-cast ----
    x = jnp.transpose(x_nchw, (0, 2, 3, 1))
    xp = jnp.pad(x, ((0, 0), (PAD, PAD), (PAD, PAD), (0, cin_p - Cin)))
    xp = xp.astype(compute_dtype)                       # (N, H+2, Wp, cin_p)

    # ---- H-tiling with a 1-row halo (overlapping slabs built wrapper-side) ----
    TH = _pick_h_tile(H, W, Wp, cin_p, cout_p, in_sz)
    nH = H // TH
    if nH == 1:
        x_tiles = xp[:, None]                           # (N, 1, H+2, Wp, cin_p)
    else:
        x_tiles = jnp.stack([xp[:, h * TH:h * TH + TH + 2 * PAD] for h in range(nH)],
                            axis=1)                     # (N, nH, TH+2, Wp, cin_p)

    # ---- VMEM budget / cost hints ----
    weight_bytes = KS * KS * cin_p * cout_p * in_sz + 2 * cout_p * 4
    per_tile = (2 * (TH + 2 * PAD) * Wp * cin_p * in_sz
                + 2 * TH * W * cout_p * 4
                + TH * W * KS * KS * cin_p * in_sz
                + 2 * TH * W * cout_p * 4)
    vmem_limit = int(min(max(int((per_tile + 2 * weight_bytes) * 1.5), 32 << 20), 48 << 20))

    flops = 2 * N * H * W * KS * KS * cin_p * cout_p + 3 * N * H * W * cout_p
    bytes_accessed = (N * nH * (TH + 2 * PAD) * Wp * cin_p * in_sz
                      + weight_bytes + N * H * W * cout_p * 4)

    out = pl.pallas_call(
        _convblock_kernel,
        out_shape=jax.ShapeDtypeStruct((N, nH, TH * W, cout_p), jnp.float32),
        grid=(N, nH),
        in_specs=[
            pl.BlockSpec((None, None, TH + 2 * PAD, Wp, cin_p),
                         lambda n, h: (n, h, 0, 0, 0)),              # halo'd image slab
            pl.BlockSpec((KS * KS * cin_p, cout_p), lambda n, h: (0, 0)),  # weights (resident)
            pl.BlockSpec((2, cout_p), lambda n, h: (0, 0)),                # folded BN (resident)
        ],
        out_specs=pl.BlockSpec((None, None, TH * W, cout_p),
                               lambda n, h: (n, h, 0, 0)),
        scratch_shapes=[pltpu.VMEM((TH, W, KS * KS * cin_p), compute_dtype)],
        compiler_params=pltpu.CompilerParams(
            dimension_semantics=("parallel", "parallel"),
            vmem_limit_bytes=vmem_limit),
        cost_estimate=pl.CostEstimate(flops=flops, transcendentals=0,
                                      bytes_accessed=bytes_accessed),
    )(x_tiles, w_p, sb_p)

    out = out.reshape(N, H, W, cout_p)[..., :Cout]      # contiguous reshape + channel slice
    return jnp.transpose(out, (0, 3, 1, 2))             # NHWC -> NCHW


# ----------------------------- params & folding -----------------------------
def make_convblock_params(key, in_channels, out_channels):
    """Deterministic params mirroring ConvBlock.__init__ shapes (torch layouts)."""
    k = jax.random.split(key, 6)
    w_oihw = 0.1 * jax.random.normal(k[0], (out_channels, in_channels, KS, KS), jnp.float32)
    conv_b = 0.1 * jax.random.normal(k[1], (out_channels,), jnp.float32)
    gamma = jax.random.uniform(k[2], (out_channels,), jnp.float32, 0.5, 1.5)
    beta = 0.1 * jax.random.normal(k[3], (out_channels,), jnp.float32)
    r_mean = 0.1 * jax.random.normal(k[4], (out_channels,), jnp.float32)
    r_var = jax.random.uniform(k[5], (out_channels,), jnp.float32, 0.5, 1.5)
    return dict(w_oihw=w_oihw, conv_b=conv_b, gamma=gamma, beta=beta,
                r_mean=r_mean, r_var=r_var)


def fold_convblock_params(p):
    """Fold conv bias + inference-mode BN into (tap-major weights, scale/bias)."""
    Cout, Cin, _, _ = p["w_oihw"].shape
    # torch conv weight (O, I, kh, kw) -> (kh, kw, I, O) -> (KS*KS, I, O), tap = kh*KS+kw
    w9 = jnp.transpose(p["w_oihw"], (2, 3, 1, 0)).reshape(KS * KS, Cin, Cout)
    scale = p["gamma"] / jnp.sqrt(p["r_var"] + BN_EPS)
    bias = p["beta"] + scale * (p["conv_b"] - p["r_mean"])
    sb = jnp.stack([scale, bias], axis=0)               # (2, Cout)
    return w9, sb


# ----------------------------- pure-JAX reference -----------------------------
def ref_conv_block(x_nchw, p):
    x = jnp.transpose(x_nchw, (0, 2, 3, 1))
    w_hwio = jnp.transpose(p["w_oihw"], (2, 3, 1, 0))
    y = lax.conv_general_dilated(x, w_hwio, (1, 1), "SAME",
                                 dimension_numbers=("NHWC", "HWIO", "NHWC"),
                                 precision=lax.Precision.HIGHEST)
    y = y + p["conv_b"]
    y = p["gamma"] * (y - p["r_mean"]) / jnp.sqrt(p["r_var"] + BN_EPS) + p["beta"]
    y = jnp.maximum(y, 0.0)
    return jnp.transpose(y, (0, 3, 1, 2))


if __name__ == "__main__":
    N, C, H, W = 2, 4, 16, 16
    key = jax.random.PRNGKey(0)
    kx, kp = jax.random.split(key)

    x = jax.random.normal(kx, (N, C, H, W), jnp.float32)
    raw = make_convblock_params(kp, C, C)
    w9, sb = fold_convblock_params(raw)

    out = jax.block_until_ready(conv_block_pallas(x, w9, sb))
    ref = jax.block_until_ready(ref_conv_block(x, raw))

    assert out.shape == (N, C, H, W) and out.dtype == jnp.float32
    err = float(jnp.max(jnp.abs(out - ref)))
    assert jnp.allclose(out, ref, atol=1e-3, rtol=1e-3), f"max abs err {err}"

    # bf16 MXU path (the perf setting for v6e/v7x): bf16 operands pre-cast in the
    # wrapper, f32 accumulation + f32 BN/ReLU epilogue; looser tolerance.
    out_bf16 = jax.block_until_ready(
        conv_block_pallas(x, w9, sb, compute_dtype=jnp.bfloat16))
    err_bf16 = float(jnp.max(jnp.abs(out_bf16 - ref)))
    assert jnp.allclose(out_bf16, ref, atol=5e-2, rtol=5e-2), f"bf16 max abs err {err_bf16}"

    print("KERNEL_OK")
</pallas_src>

<mosaic_0001>
module attributes {stable_mosaic.version = 11 : i64} {
  func.func @_convblock_kernel(%arg0: i32, %arg1: i32, %arg2: memref<1x1x18x18x128xf32, #tpu.memory_space<vmem>>, %arg3: memref<1152x128xf32, #tpu.memory_space<vmem>>, %arg4: memref<2x128xf32, #tpu.memory_space<vmem>>, %arg5: memref<1x1x256x128xf32, #tpu.memory_space<vmem>>, %arg6: memref<16x16x1152xf32, #tpu.memory_space<vmem>>) attributes {dimension_semantics = [#tpu.dimension_semantics<parallel>, #tpu.dimension_semantics<parallel>], iteration_bounds = array<i64: 2, 1>, scalar_prefetch = 0 : i64, scratch_operands = 1 : i64, tpu.core_type = #tpu.core_type<tc>, window_params = [{transform_indices = @transform_0, window_bounds = array<i64: 1, 1, 18, 18, 128>}, {pipeline_mode = #tpu.pipeline_mode<synchronous>, transform_indices = @transform_1, window_bounds = array<i64: 1152, 128>}, {pipeline_mode = #tpu.pipeline_mode<synchronous>, transform_indices = @transform_2, window_bounds = array<i64: 2, 128>}, {transform_indices = @transform_3, window_bounds = array<i64: 1, 1, 256, 128>}]} {
    %c0 = arith.constant 0 : index
    %c0_0 = arith.constant 0 : index
    %c0_1 = arith.constant 0 : index
    %c0_2 = arith.constant 0 : index
    %c0_3 = arith.constant 0 : index
    %0 = vector.load %arg2[%c0, %c0_0, %c0_1, %c0_2, %c0_3] : memref<1x1x18x18x128xf32, #tpu.memory_space<vmem>>, vector<1x1x16x16x128xf32>
    %1 = vector.shape_cast %0 : vector<1x1x16x16x128xf32> to vector<16x16x128xf32>
    %c0_4 = arith.constant 0 : index
    %c0_5 = arith.constant 0 : index
    %c0_6 = arith.constant 0 : index
    %2 = vector.load %arg6[%c0_4, %c0_5, %c0_6] : memref<16x16x1152xf32, #tpu.memory_space<vmem>>, vector<16x16x128xf32>
    tpu.vector_store %arg6[%c0_4, %c0_5, %c0_6], %1 {strides = array<i32>} : memref<16x16x1152xf32, #tpu.memory_space<vmem>>, vector<16x16x128xf32>,
    %c0_7 = arith.constant 0 : index
    %c0_8 = arith.constant 0 : index
    %c0_9 = arith.constant 0 : index
    %c1 = arith.constant 1 : index
    %c0_10 = arith.constant 0 : index
    %3 = vector.load %arg2[%c0_7, %c0_8, %c0_9, %c1, %c0_10] : memref<1x1x18x18x128xf32, #tpu.memory_space<vmem>>, vector<1x1x16x16x128xf32>
    %4 = vector.shape_cast %3 : vector<1x1x16x16x128xf32> to vector<16x16x128xf32>
    %c0_11 = arith.constant 0 : index
    %c0_12 = arith.constant 0 : index
    %c128 = arith.constant 128 : index
    %5 = vector.load %arg6[%c0_11, %c0_12, %c128] : memref<16x16x1152xf32, #tpu.memory_space<vmem>>, vector<16x16x128xf32>
    tpu.vector_store %arg6[%c0_11, %c0_12, %c128], %4 {strides = array<i32>} : memref<16x16x1152xf32, #tpu.memory_space<vmem>>, vector<16x16x128xf32>,
    %c0_13 = arith.constant 0 : index
    %c0_14 = arith.constant 0 : index
    %c0_15 = arith.constant 0 : index
    %c2 = arith.constant 2 : index
    %c0_16 = arith.constant 0 : index
    %6 = vector.load %arg2[%c0_13, %c0_14, %c0_15, %c2, %c0_16] : memref<1x1x18x18x128xf32, #tpu.memory_space<vmem>>, vector<1x1x16x16x128xf32>
    %7 = vector.shape_cast %6 : vector<1x1x16x16x128xf32> to vector<16x16x128xf32>
    %c0_17 = arith.constant 0 : index
    %c0_18 = arith.constant 0 : index
    %c256 = arith.constant 256 : index
    %8 = vector.load %arg6[%c0_17, %c0_18, %c256] : memref<16x16x1152xf32, #tpu.memory_space<vmem>>, vector<16x16x128xf32>
    tpu.vector_store %arg6[%c0_17, %c0_18, %c256], %7 {strides = array<i32>} : memref<16x16x1152xf32, #tpu.memory_space<vmem>>, vector<16x16x128xf32>,
    %c0_19 = arith.constant 0 : index
    %c0_20 = arith.constant 0 : index
    %c1_21 = arith.constant 1 : index
    %c0_22 = arith.constant 0 : index
    %c0_23 = arith.constant 0 : index
    %9 = vector.load %arg2[%c0_19, %c0_20, %c1_21, %c0_22, %c0_23] : memref<1x1x18x18x128xf32, #tpu.memory_space<vmem>>, vector<1x1x16x16x128xf32>
    %10 = vector.shape_cast %9 : vector<1x1x16x16x128xf32> to vector<16x16x128xf32>
    %c0_24 = arith.constant 0 : index
    %c0_25 = arith.constant 0 : index
    %c384 = arith.constant 384 : index
    %11 = vector.load %arg6[%c0_24, %c0_25, %c384] : memref<16x16x1152xf32, #tpu.memory_space<vmem>>, vector<16x16x128xf32>
    tpu.vector_store %arg6[%c0_24, %c0_25, %c384], %10 {strides = array<i32>} : memref<16x16x1152xf32, #tpu.memory_space<vmem>>, vector<16x16x128xf32>,
    %c0_26 = arith.constant 0 : index
    %c0_27 = arith.constant 0 : index
    %c1_28 = arith.constant 1 : index
    %c1_29 = arith.constant 1 : index
    %c0_30 = arith.constant 0 : index
    %12 = vector.load %arg2[%c0_26, %c0_27, %c1_28, %c1_29, %c0_30] : memref<1x1x18x18x128xf32, #tpu.memory_space<vmem>>, vector<1x1x16x16x128xf32>
    %13 = vector.shape_cast %12 : vector<1x1x16x16x128xf32> to vector<16x16x128xf32>
    %c0_31 = arith.constant 0 : index
    %c0_32 = arith.constant 0 : index
    %c512 = arith.constant 512 : index
    %14 = vector.load %arg6[%c0_31, %c0_32, %c512] : memref<16x16x1152xf32, #tpu.memory_space<vmem>>, vector<16x16x128xf32>
    tpu.vector_store %arg6[%c0_31, %c0_32, %c512], %13 {strides = array<i32>} : memref<16x16x1152xf32, #tpu.memory_space<vmem>>, vector<16x16x128xf32>,
    %c0_33 = arith.constant 0 : index
    %c0_34 = arith.constant 0 : index
    %c1_35 = arith.constant 1 : index
    %c2_36 = arith.constant 2 : index
    %c0_37 = arith.constant 0 : index
    %15 = vector.load %arg2[%c0_33, %c0_34, %c1_35, %c2_36, %c0_37] : memref<1x1x18x18x128xf32, #tpu.memory_space<vmem>>, vector<1x1x16x16x128xf32>
    %16 = vector.shape_cast %15 : vector<1x1x16x16x128xf32> to vector<16x16x128xf32>
    %c0_38 = arith.constant 0 : index
    %c0_39 = arith.constant 0 : index
    %c640 = arith.constant 640 : index
    %17 = vector.load %arg6[%c0_38, %c0_39, %c640] : memref<16x16x1152xf32, #tpu.memory_space<vmem>>, vector<16x16x128xf32>
    tpu.vector_store %arg6[%c0_38, %c0_39, %c640], %16 {strides = array<i32>} : memref<16x16x1152xf32, #tpu.memory_space<vmem>>, vector<16x16x128xf32>,
    %c0_40 = arith.constant 0 : index
    %c0_41 = arith.constant 0 : index
    %c2_42 = arith.constant 2 : index
    %c0_43 = arith.constant 0 : index
    %c0_44 = arith.constant 0 : index
    %18 = vector.load %arg2[%c0_40, %c0_41, %c2_42, %c0_43, %c0_44] : memref<1x1x18x18x128xf32, #tpu.memory_space<vmem>>, vector<1x1x16x16x128xf32>
    %19 = vector.shape_cast %18 : vector<1x1x16x16x128xf32> to vector<16x16x128xf32>
    %c0_45 = arith.constant 0 : index
    %c0_46 = arith.constant 0 : index
    %c768 = arith.constant 768 : index
    %20 = vector.load %arg6[%c0_45, %c0_46, %c768] : memref<16x16x1152xf32, #tpu.memory_space<vmem>>, vector<16x16x128xf32>
    tpu.vector_store %arg6[%c0_45, %c0_46, %c768], %19 {strides = array<i32>} : memref<16x16x1152xf32, #tpu.memory_space<vmem>>, vector<16x16x128xf32>,
    %c0_47 = arith.constant 0 : index
    %c0_48 = arith.constant 0 : index
    %c2_49 = arith.constant 2 : index
    %c1_50 = arith.constant 1 : index
    %c0_51 = arith.constant 0 : index
    %21 = vector.load %arg2[%c0_47, %c0_48, %c2_49, %c1_50, %c0_51] : memref<1x1x18x18x128xf32, #tpu.memory_space<vmem>>, vector<1x1x16x16x128xf32>
    %22 = vector.shape_cast %21 : vector<1x1x16x16x128xf32> to vector<16x16x128xf32>
    %c0_52 = arith.constant 0 : index
    %c0_53 = arith.constant 0 : index
    %c896 = arith.constant 896 : index
    %23 = vector.load %arg6[%c0_52, %c0_53, %c896] : memref<16x16x1152xf32, #tpu.memory_space<vmem>>, vector<16x16x128xf32>
    tpu.vector_store %arg6[%c0_52, %c0_53, %c896], %22 {strides = array<i32>} : memref<16x16x1152xf32, #tpu.memory_space<vmem>>, vector<16x16x128xf32>,
    %c0_54 = arith.constant 0 : index
    %c0_55 = arith.constant 0 : index
    %c2_56 = arith.constant 2 : index
    %c2_57 = arith.constant 2 : index
    %c0_58 = arith.constant 0 : index
    %24 = vector.load %arg2[%c0_54, %c0_55, %c2_56, %c2_57, %c0_58] : memref<1x1x18x18x128xf32, #tpu.memory_space<vmem>>, vector<1x1x16x16x128xf32>
    %25 = vector.shape_cast %24 : vector<1x1x16x16x128xf32> to vector<16x16x128xf32>
    %c0_59 = arith.constant 0 : index
    %c0_60 = arith.constant 0 : index
    %c1024 = arith.constant 1024 : index
    %26 = vector.load %arg6[%c0_59, %c0_60, %c1024] : memref<16x16x1152xf32, #tpu.memory_space<vmem>>, vector<16x16x128xf32>
    tpu.vector_store %arg6[%c0_59, %c0_60, %c1024], %25 {strides = array<i32>} : memref<16x16x1152xf32, #tpu.memory_space<vmem>>, vector<16x16x128xf32>,
    %c0_61 = arith.constant 0 : index
    %c0_62 = arith.constant 0 : index
    %c0_63 = arith.constant 0 : index
    %27 = vector.load %arg6[%c0_61, %c0_62, %c0_63] : memref<16x16x1152xf32, #tpu.memory_space<vmem>>, vector<16x16x1152xf32>
    %28 = vector.shape_cast %27 : vector<16x16x1152xf32> to vector<256x1152xf32>
    %c0_64 = arith.constant 0 : index
    %c0_65 = arith.constant 0 : index
    %29 = vector.load %arg3[%c0_64, %c0_65] : memref<1152x128xf32, #tpu.memory_space<vmem>>, vector<1152x128xf32>
    %cst = arith.constant dense<0.000000e+00> : vector<256x128xf32>
    %30 = tpu.matmul %28, %29, %cst {dimension_numbers = #tpu.dot_dimension_numbers<[1], [0], [0], [1], [0, 0, 1, 1], [], []>} : vector<256x1152xf32>, vector<1152x128xf32>, vector<256x128xf32> -> vector<256x128xf32>
    %c0_66 = arith.constant 0 : index
    %c0_67 = arith.constant 0 : index
    %31 = vector.load %arg4[%c0_66, %c0_67] : memref<2x128xf32, #tpu.memory_space<vmem>>, vector<2x128xf32>
    %32 = vector.extract_strided_slice %31 {offsets = [0, 0], sizes = [1, 128], strides = [1, 1]} : vector<2x128xf32> to vector<1x128xf32>
    %33 = vector.broadcast %32 : vector<1x128xf32> to vector<256x128xf32>
    %34 = arith.mulf %30, %33 : vector<256x128xf32>
    %35 = vector.extract_strided_slice %31 {offsets = [1, 0], sizes = [1, 128], strides = [1, 1]} : vector<2x128xf32> to vector<1x128xf32>
    %36 = vector.broadcast %35 : vector<1x128xf32> to vector<256x128xf32>
    %37 = arith.addf %34, %36 : vector<256x128xf32>
    %cst_68 = arith.constant 0.000000e+00 : f32
    %38 = vector.broadcast %cst_68 : f32 to vector<256x128xf32>
    %39 = arith.maximumf %37, %38 : vector<256x128xf32>
    %c0_69 = arith.constant 0 : index
    %c0_70 = arith.constant 0 : index
    %c0_71 = arith.constant 0 : index
    %c0_72 = arith.constant 0 : index
    %40 = vector.load %arg5[%c0_69, %c0_70, %c0_71, %c0_72] : memref<1x1x256x128xf32, #tpu.memory_space<vmem>>, vector<1x1x256x128xf32>
    %41 = vector.shape_cast %40 : vector<1x1x256x128xf32> to vector<256x128xf32>
    %42 = vector.shape_cast %39 : vector<256x128xf32> to vector<1x1x256x128xf32>
    tpu.vector_store %arg5[%c0_69, %c0_70, %c0_71, %c0_72], %42 {strides = array<i32>} : memref<1x1x256x128xf32, #tpu.memory_space<vmem>>, vector<1x1x256x128xf32>,
    return
  }
  func.func @transform_0(%arg0: i32, %arg1: i32) -> (i32, i32, i32, i32, i32) {
    %c0_i32 = arith.constant 0 : i32
    %c0_i32_0 = arith.constant 0 : i32
    %c0_i32_1 = arith.constant 0 : i32
    %c0_i32_2 = arith.constant 0 : i32
    return %arg0, %arg1, %c0_i32, %c0_i32_0, %c0_i32_1 : i32, i32, i32, i32, i32
  }
  func.func @transform_1(%arg0: i32, %arg1: i32) -> (i32, i32) {
    %c0_i32 = arith.constant 0 : i32
    %c0_i32_0 = arith.constant 0 : i32
    %c0_i32_1 = arith.constant 0 : i32
    return %c0_i32, %c0_i32_0 : i32, i32
  }
  func.func @transform_2(%arg0: i32, %arg1: i32) -> (i32, i32) {
    %c0_i32 = arith.constant 0 : i32
    %c0_i32_0 = arith.constant 0 : i32
    %c0_i32_1 = arith.constant 0 : i32
    return %c0_i32, %c0_i32_0 : i32, i32
  }
  func.func @transform_3(%arg0: i32, %arg1: i32) -> (i32, i32, i32, i32) {
    %c0_i32 = arith.constant 0 : i32
    %c0_i32_0 = arith.constant 0 : i32
    %c0_i32_1 = arith.constant 0 : i32
    return %arg0, %arg1, %c0_i32, %c0_i32_0 : i32, i32, i32, i32
  }
}

</mosaic_0001>

<bundles_post_ra>
// kernel: conv_block_pallas.1
= control target key start
LH: loop header
LB: loop body
LE: loop exit
PB: predicated region body
PF: predicated region fallthrough
CT: control target
= control target key end

     0   :  { %s2777_s12 = smov 0   ;;  %s2779_s13 = smov 0   ;;  %s3850_s0 = inlined_call_operand.vmem [shape: f32[2,1,18,18,128], index: 0, kind: input, shape index: {}]   ;;  %s3851_s1 = inlined_call_operand.vmem [shape: f32[1152,128], index: 1, kind: input, shape index: {}]   ;;  %s3852_s2 = inlined_call_operand.vmem [shape: f32[2,128], index: 2, kind: input, shape index: {}]   ;;  %s3853_s3 = inlined_call_operand.vmem [shape: f32[2,1,256,128], index: 3, kind: output, shape index: {}]  }
   0x1   :  { %s2781_s14 = smov 0  }
   0x2 LB: > { %s25_s15 = sadd.s32 1, %s2751_s13  ;;  %p2461_p0 = scmp.ge.s32.totalorder %s2755_s14, 1  ;;  %s2755_s14 = sphi %s2781_s14, %s13_s14   ;;  %s2751_s13 = sphi %s2779_s13, %s3855_s13   ;;  %s2747_s12 = sphi %s2777_s12, %s3854_s12  }
   0x3   : > { %p27_p1 = scmp.ge.s32.totalorder %s25_s15, 2  ;;  %p157_p2 = scmp.lt.s32.totalorder %s2755_s14, 3 }
   0x5   : > { %s3857_s15 = smov (%p27_p1, %s25_s15), 0  ;;  %p158_p3 = pnand %p2461_p0, %p157_p2 }
   0x6   : > { %p189_p4 = scmp.lt.s32.totalorder (!%p158_p3), %s2747_s12, 1 }
   0x7   : > { %161 = sbr.rel (%p158_p3) target bundleno = 757 (0x2f5), region = 32 }
   0xc   : > { %v1088_v0 = vld [vmem:[%s3851_s1 + $0x78] sm:$0xff]  ;;  %v1087_v1 = vld [vmem:[%s3851_s1 + $0x70] sm:$0xff]  ;;  %v1086_v2 = vld [vmem:[%s3851_s1 + $0x68] sm:$0xff]  ;;  %s3859_s12 = smov (!%p189_p4, %s2747_s12), 1 }
   0xd   : > { %2660 = vmatpush.msra.mxu1 %v1088_v0  ;;  %2661 = vmatpush.msra.mxu2 %v1088_v0  ;;  %v1085_v3 = vld [vmem:[%s3851_s1 + $0x60] sm:$0xff]  ;;  %v1084_v4 = vld [vmem:[%s3851_s1 + $0x58] sm:$0xff]  ;;  %v1083_v5 = vld [vmem:[%s3851_s1 + $0x50] sm:$0xff]  ;;  %s2708_s19 = smul.u32 432, %s3859_s12  ;;  %s2659_s22 = sshll.u32 %s3859_s12, 8 }
   0xe   : > { %2662 = vmatpush.msra.mxu3 %v1088_v0  ;;  %1217 = vmatpush.msra.mxu0 %v1088_v0  ;;  %v1082_v6 = vld [vmem:[%s3851_s1 + $0x48] sm:$0xff]  ;;  %v1081_v7 = vld [vmem:[%s3851_s1 + $0x40] sm:$0xff]  ;;  %v1080_v8 = vld [vmem:[%s3851_s1 + $0x38] sm:$0xff]  ;;  %s3673_s25 = scalar_lea.vmem %s3853_s3, %s2659_s22 }
   0xf   : > { %2663 = vmatpush.msra.mxu1 %v1087_v1  ;;  %2664 = vmatpush.msra.mxu2 %v1087_v1  ;;  %v1079_v9 = vld [vmem:[%s3851_s1 + $0x30] sm:$0xff]  ;;  %v1078_v10 = vld [vmem:[%s3851_s1 + $0x28] sm:$0xff]  ;;  %v1077_v11 = vld [vmem:[%s3851_s1 + $0x20] sm:$0xff]  ;;  %s2850_s26 = scalar_lea.vmem %s3850_s0, %s2708_s19 }
  0x10   : > { %2665 = vmatpush.msra.mxu3 %v1087_v1  ;;  %1218 = vmatpush.msra.mxu0 %v1087_v1  ;;  %v1076_v12 = vld [vmem:[%s3851_s1 + $0x18] sm:$0xff]  ;;  %v1075_v13 = vld [vmem:[%s3851_s1 + $0x10] sm:$0xff]  ;;  %v1074_v14 = vld [vmem:[%s3851_s1 + $0x8] sm:$0xff] }
  0x11   : > { %2666 = vmatpush.msra.mxu1 %v1086_v2  ;;  %2667 = vmatpush.msra.mxu2 %v1086_v2  ;;  %v1073_v15 = vld [vmem:[%s3851_s1] sm:$0xff]  ;;  %v1120_v18 = vld [vmem:[%s3851_s1 + $0x178] sm:$0xff]  ;;  %v1119_v22 = vld [vmem:[%s3851_s1 + $0x170] sm:$0xff] }
  0x12   : > { %2668 = vmatpush.msra.mxu3 %v1086_v2  ;;  %1219 = vmatpush.msra.mxu0 %v1086_v2  ;;  %v2856_v16 = vld [vmem:[%s2850_s26 + $0x60] sm:$0xff]  ;;  %v1104_v20 = vld [vmem:[%s3851_s1 + $0xf8] sm:$0xff]  ;;  %v1103_v23 = vld [vmem:[%s3851_s1 + $0xf0] sm:$0xff] }
  0x13   : > { %2669 = vmatpush.msra.mxu1 %v1085_v3  ;;  %2670 = vmatpush.msra.mxu2 %v1085_v3  ;;  %v2859_v17 = vld [vmem:[%s2850_s26 + $0xc0] sm:$0xff]  ;;  %v1136_v21 = vld [vmem:[%s3851_s1 + $0x1f8] sm:$0xff]  ;;  %v1135_v24 = vld [vmem:[%s3851_s1 + $0x1f0] sm:$0xff] }
  0x14   : > { %2671 = vmatpush.msra.mxu3 %v1085_v3  ;;  %1220 = vmatpush.msra.mxu0 %v1085_v3  ;;  %v231_v19 = vld [vmem:[%s2850_s26 + $0x120] sm:$0xff]  ;;  %v1118_v25 = vld [vmem:[%s3851_s1 + $0x168] sm:$0xff]  ;;  %v1152_v29 = vld [vmem:[%s3851_s1 + $0x278] sm:$0xff] }
  0x15   : > { %2672 = vmatpush.msra.mxu1 %v1084_v4  ;;  %2673 = vmatpush.msra.mxu2 %v1084_v4  ;;  %v207_v26 = vld [vmem:[%s2850_s26] sm:$0xff]  ;;  %v1102_v27 = vld [vmem:[%s3851_s1 + $0xe8] sm:$0xff]  ;;  %v1151_v35 = vld [vmem:[%s3851_s1 + $0x270] sm:$0xff] }
  0x16   : > { %2674 = vmatpush.msra.mxu3 %v1084_v4  ;;  %1221 = vmatpush.msra.mxu0 %v1084_v4  ;;  %v1134_v28 = vld [vmem:[%s3851_s1 + $0x1e8] sm:$0xff]  ;;  %v1117_v32 = vld [vmem:[%s3851_s1 + $0x160] sm:$0xff]  ;;  %v1116_v37 = vld [vmem:[%s3851_s1 + $0x158] sm:$0xff] }
  0x17   : > { %2675 = vmatpush.msra.mxu1 %v1083_v5  ;;  %2676 = vmatpush.msra.mxu2 %v1083_v5  ;;  %v2896_v30 = vld [vmem:[%s2850_s26 + $0x68] sm:$0xff]  ;;  %v1133_v33 = vld [vmem:[%s3851_s1 + $0x1e0] sm:$0xff]  ;;  %v1132_v38 = vld [vmem:[%s3851_s1 + $0x1d8] sm:$0xff] }
  0x18   : > { %2677 = vmatpush.msra.mxu3 %v1083_v5  ;;  %1222 = vmatpush.msra.mxu0 %v1083_v5  ;;  %v2899_v31 = vld [vmem:[%s2850_s26 + $0xc8] sm:$0xff]  ;;  %v1101_v36 = vld [vmem:[%s3851_s1 + $0xe0] sm:$0xff]  ;;  %v1100_v40 = vld [vmem:[%s3851_s1 + $0xd8] sm:$0xff] }
  0x19   : > { %2678 = vmatpush.msra.mxu1 %v1082_v6  ;;  %2679 = vmatpush.msra.mxu2 %v1082_v6  ;;  %v232_v34 = vld [vmem:[%s2850_s26 + $0x128] sm:$0xff]  ;;  %v1115_v41 = vld [vmem:[%s3851_s1 + $0x150] sm:$0xff]  ;;  %v1149_v44 = vld [vmem:[%s3851_s1 + $0x260] sm:$0xff] }
  0x1a   : > { %2680 = vmatpush.msra.mxu3 %v1082_v6  ;;  %1223 = vmatpush.msra.mxu0 %v1082_v6  ;;  %v1150_v39 = vld [vmem:[%s3851_s1 + $0x268] sm:$0xff]  ;;  %v1131_v43 = vld [vmem:[%s3851_s1 + $0x1d0] sm:$0xff]  ;;  %v2942_v46 = vld [vmem:[%s2850_s26 + $0x78] sm:$0xff] }
  0x1b   : > { %2681 = vmatpush.msra.mxu1 %v1081_v7  ;;  %2682 = vmatpush.msra.mxu2 %v1081_v7  ;;  %v208_v42 = vld [vmem:[%s2850_s26 + $0x8] sm:$0xff]  ;;  %v1099_v45 = vld [vmem:[%s3851_s1 + $0xd0] sm:$0xff]  ;;  %v2945_v47 = vld [vmem:[%s2850_s26 + $0xd8] sm:$0xff] }
  0x1c   : > { %2683 = vmatpush.msra.mxu3 %v1081_v7  ;;  %1224 = vmatpush.msra.mxu0 %v1081_v7  ;;  %v1114_v48 = vld [vmem:[%s3851_s1 + $0x148] sm:$0xff]  ;;  %v233_v50 = vld [vmem:[%s2850_s26 + $0x138] sm:$0xff]  ;;  %v1113_v53 = vld [vmem:[%s3851_s1 + $0x140] sm:$0xff] }
  0x1d   : > { %2684 = vmatpush.msra.mxu1 %v1080_v8  ;;  %2685 = vmatpush.msra.mxu2 %v1080_v8  ;;  %v1130_v49 = vld [vmem:[%s3851_s1 + $0x1c8] sm:$0xff]  ;;  %v1148_v51 = vld [vmem:[%s3851_s1 + $0x258] sm:$0xff]  ;;  %v1129_v54 = vld [vmem:[%s3851_s1 + $0x1c0] sm:$0xff] }
  0x1e   : > { %2686 = vmatpush.msra.mxu3 %v1080_v8  ;;  %1225 = vmatpush.msra.mxu0 %v1080_v8  ;;  %v1098_v52 = vld [vmem:[%s3851_s1 + $0xc8] sm:$0xff]  ;;  %v1147_v55 = vld [vmem:[%s3851_s1 + $0x250] sm:$0xff]  ;;  %v1097_v56 = vld [vmem:[%s3851_s1 + $0xc0] sm:$0xff] }
  0x1f   : > { %2687 = vmatpush.msra.mxu1 %v1079_v9  ;;  %2688 = vmatpush.msra.mxu2 %v1079_v9  ;;  %v1112_v57 = vld [vmem:[%s3851_s1 + $0x138] sm:$0xff]  ;;  %v1146_v60 = vld [vmem:[%s3851_s1 + $0x248] sm:$0xff]  ;;  %v2990_v62 = vld [vmem:[%s2850_s26 + $0x80] sm:$0xff] }
  0x20   : > { %2689 = vmatpush.msra.mxu3 %v1079_v9  ;;  %1226 = vmatpush.msra.mxu0 %v1079_v9  ;;  %v2978_v58 = vld [vmem:[%s2850_s26 + $0x18] sm:$0xff]  ;;  %v2993_v63 = vld [vmem:[%s2850_s26 + $0xe0] sm:$0xff]  ;;  %v1111_v0 = vld [vmem:[%s3851_s1 + $0x130] sm:$0xff] }
  0x21   : > { %2690 = vmatpush.msra.mxu1 %v1078_v10  ;;  %2691 = vmatpush.msra.mxu2 %v1078_v10  ;;  %v1128_v59 = vld [vmem:[%s3851_s1 + $0x1b8] sm:$0xff]  ;;  %v1127_v1 = vld [vmem:[%s3851_s1 + $0x1b0] sm:$0xff]  ;;  %v234_v2 = vld [vmem:[%s2850_s26 + $0x140] sm:$0xff] }
  0x22   : > { %2692 = vmatpush.msra.mxu3 %v1078_v10  ;;  %1227 = vmatpush.msra.mxu0 %v1078_v10  ;;  %v1096_v61 = vld [vmem:[%s3851_s1 + $0xb8] sm:$0xff]  ;;  %v1145_v3 = vld [vmem:[%s3851_s1 + $0x240] sm:$0xff]  ;;  %v1095_v4 = vld [vmem:[%s3851_s1 + $0xb0] sm:$0xff] }
  0x23   : > { %2693 = vmatpush.msra.mxu1 %v1077_v11  ;;  %2694 = vmatpush.msra.mxu2 %v1077_v11  ;;  %v1110_v5 = vld [vmem:[%s3851_s1 + $0x128] sm:$0xff]  ;;  %v1144_v7 = vld [vmem:[%s3851_s1 + $0x238] sm:$0xff]  ;;  %v1109_v9 = vld [vmem:[%s3851_s1 + $0x120] sm:$0xff] }
  0x24   : > { %2695 = vmatpush.msra.mxu3 %v1077_v11  ;;  %1228 = vmatpush.msra.mxu0 %v1077_v11  ;;  %v1126_v6 = vld [vmem:[%s3851_s1 + $0x1a8] sm:$0xff]  ;;  %v3027_v10 = vld [vmem:[%s2850_s26 + $0x20] sm:$0xff] }
  0x25   : > { %2696 = vmatpush.msra.mxu1 %v1076_v12  ;;  %2697 = vmatpush.msra.mxu2 %v1076_v12  ;;  %v1094_v8 = vld [vmem:[%s3851_s1 + $0xa8] sm:$0xff]  ;;  %v1125_v11 = vld [vmem:[%s3851_s1 + $0x1a0] sm:$0xff] }
  0x26   : > { %2698 = vmatpush.msra.mxu3 %v1076_v12  ;;  %1229 = vmatpush.msra.mxu0 %v1076_v12  ;;  %v1143_v12 = vld [vmem:[%s3851_s1 + $0x230] sm:$0xff] }
  0x27   : > { %2699 = vmatpush.msra.mxu1 %v1075_v13  ;;  %2700 = vmatpush.msra.mxu2 %v1075_v13 }
  0x28   : > { %2701 = vmatpush.msra.mxu3 %v1075_v13  ;;  %1230 = vmatpush.msra.mxu0 %v1075_v13  ;;  %v1093_v13 = vld [vmem:[%s3851_s1 + $0xa0] sm:$0xff] }
  0x29   : > { %2702 = vmatpush.msra.mxu1 %v1074_v14  ;;  %2703 = vmatpush.msra.mxu2 %v1074_v14 }
  0x2a   : > { %2704 = vmatpush.msra.mxu3 %v1074_v14  ;;  %1231 = vmatpush.msra.mxu0 %v1074_v14  ;;  %v3039_v14 = vld [vmem:[%s2850_s26 + $0x90] sm:$0xff] }
  0x2b   : > { %2705 = vmatpush.msra.mxu1 %v1073_v15  ;;  %2706 = vmatpush.msra.mxu2 %v1073_v15 }
  0x2c   : > { %1257 = vmatmul.f32.vlgmr.msra.gmra.mxu1 %v2856_v16  ;;  %1281 = vmatmul.f32.vlgmr.msra.gmra.mxu2 %v2859_v17 }
  0x2d   : > { %1443 = vmatpush.msrb.mxu2 %v1120_v18  ;;  %2707 = vmatpush.msra.mxu3 %v1073_v15  ;;  %v1108_v18 = vld [vmem:[%s3851_s1 + $0x118] sm:$0xff] }
  0x2e   : > { %1305 = vmatmul.f32.vlgmr.msra.gmra.mxu3 %v231_v19  ;;  %1330 = vmatpush.msrb.mxu1 %v1104_v20  ;;  %v1124_v19 = vld [vmem:[%s3851_s1 + $0x198] sm:$0xff]  ;;  %v235_v20 = vld [vmem:[%s2850_s26 + $0x150] sm:$0xff] }
  0x2f   : > { %1556 = vmatpush.msrb.mxu3 %v1136_v21  ;;  %1444 = vmatpush.msrb.mxu2 %v1119_v22  ;;  %v1142_v21 = vld [vmem:[%s3851_s1 + $0x228] sm:$0xff]  ;;  %v1092_v22 = vld [vmem:[%s3851_s1 + $0x98] sm:$0xff] }
  0x30   : > { %1331 = vmatpush.msrb.mxu1 %v1103_v23  ;;  %1232 = vmatpush.msra.mxu0 %v1073_v15  ;;  %v3042_v15 = vld [vmem:[%s2850_s26 + $0xf0] sm:$0xff] }
  0x31   : > { %1557 = vmatpush.msrb.mxu3 %v1135_v24  ;;  %1445 = vmatpush.msrb.mxu2 %v1118_v25  ;;  %v1107_v23 = vld [vmem:[%s3851_s1 + $0x110] sm:$0xff]  ;;  %v1141_v25 = vld [vmem:[%s3851_s1 + $0x220] sm:$0xff] }
  0x32   : > { %1233 = vmatmul.f32.vlgmr.msra.gmra.mxu0 %v207_v26  ;;  %1332 = vmatpush.msrb.mxu1 %v1102_v27  ;;  %v1123_v24 = vld [vmem:[%s3851_s1 + $0x190] sm:$0xff]  ;;  %v1106_v27 = vld [vmem:[%s3851_s1 + $0x108] sm:$0xff] }
  0x33   : > { %1558 = vmatpush.msrb.mxu3 %v1134_v28  ;;  %1669 = vmatpush.msrb.mxu0 %v1152_v29  ;;  %v1091_v26 = vld [vmem:[%s3851_s1 + $0x90] sm:$0xff]  ;;  %v1122_v29 = vld [vmem:[%s3851_s1 + $0x188] sm:$0xff] }
  0x34   : > { %1260 = vmatmul.f32.gmra.mxu1 %v2896_v30  ;;  %1284 = vmatmul.f32.gmra.mxu2 %v2899_v31  ;;  %v3076_v28 = vld [vmem:[%s2850_s26 + $0x30] sm:$0xff] }
  0x35   : > { %1446 = vmatpush.msrb.mxu2 %v1117_v32  ;;  %1559 = vmatpush.msrb.mxu3 %v1133_v33  ;;  %v1140_v32 = vld [vmem:[%s3851_s1 + $0x218] sm:$0xff]  ;;  %v1090_v33 = vld [vmem:[%s3851_s1 + $0x88] sm:$0xff] }
  0x36   : > { %1308 = vmatmul.f32.gmra.mxu3 %v232_v34  ;;  %1670 = vmatpush.msrb.mxu0 %v1151_v35  ;;  %v3088_v34 = vld [vmem:[%s2850_s26 + $0x98] sm:$0xff] }
  0x37   : > { %1333 = vmatpush.msrb.mxu1 %v1101_v36  ;;  %1447 = vmatpush.msrb.mxu2 %v1116_v37  ;;  %v3091_v35 = vld [vmem:[%s2850_s26 + $0xf8] sm:$0xff]  ;;  %v1105_v36 = vld [vmem:[%s3851_s1 + $0x100] sm:$0xff] }
  0x38   : > { %1560 = vmatpush.msrb.mxu3 %v1132_v38  ;;  %1671 = vmatpush.msrb.mxu0 %v1150_v39  ;;  %v1121_v37 = vld [vmem:[%s3851_s1 + $0x180] sm:$0xff]  ;;  %v236_v38 = vld [vmem:[%s2850_s26 + $0x158] sm:$0xff]  ;;  %v1139_v39 = vld [vmem:[%s3851_s1 + $0x210] sm:$0xff] }
  0x39   : > { %1334 = vmatpush.msrb.mxu1 %v1100_v40  ;;  %1448 = vmatpush.msrb.mxu2 %v1115_v41  ;;  %v1089_v40 = vld [vmem:[%s3851_s1 + $0x80] sm:$0xff]  ;;  %v1184_v41 = vld [vmem:[%s3851_s1 + $0x378] sm:$0xff] }
  0x3a   : > { %1236 = vmatmul.f32.gmra.mxu0 %v208_v42  ;;  %1561 = vmatpush.msrb.mxu3 %v1131_v43  ;;  %v1138_v42 = vld [vmem:[%s3851_s1 + $0x208] sm:$0xff]  ;;  %v1200_v43 = vld [vmem:[%s3851_s1 + $0x3f8] sm:$0xff] }
  0x3b   : > { %1672 = vmatpush.msrb.mxu0 %v1149_v44  ;;  %1335 = vmatpush.msrb.mxu1 %v1099_v45  ;;  %v1168_v44 = vld [vmem:[%s3851_s1 + $0x2f8] sm:$0xff] }
  0x3c   : > { %1263 = vmatmul.f32.gmra.mxu1 %v2942_v46  ;;  %1287 = vmatmul.f32.gmra.mxu2 %v2945_v47  ;;  %v3122_v45 = vld [vmem:[%s2850_s26 + $0x38] sm:$0xff] }
  0x3d   : > { %1449 = vmatpush.msrb.mxu2 %v1114_v48  ;;  %1562 = vmatpush.msrb.mxu3 %v1130_v49  ;;  %v1137_v48 = vld [vmem:[%s3851_s1 + $0x200] sm:$0xff]  ;;  %v3128_v49 = vld [vmem:[%s2850_s26 + $0xa8] sm:$0xff] }
  0x3e   : > { %1311 = vmatmul.f32.gmra.mxu3 %v233_v50  ;;  %1673 = vmatpush.msrb.mxu0 %v1148_v51  ;;  %v3131_v50 = vld [vmem:[%s2850_s26 + $0x108] sm:$0xff]  ;;  %v1216_v51 = vld [vmem:[%s3851_s1 + $0x478] sm:$0xff] }
  0x3f   : > { %1336 = vmatpush.msrb.mxu1 %v1098_v52  ;;  %1450 = vmatpush.msrb.mxu2 %v1113_v53  ;;  %v237_v52 = vld [vmem:[%s2850_s26 + $0x168] sm:$0xff]  ;;  %v1183_v53 = vld [vmem:[%s3851_s1 + $0x370] sm:$0xff] }
  0x40   : > { %1563 = vmatpush.msrb.mxu3 %v1129_v54  ;;  %1674 = vmatpush.msrb.mxu0 %v1147_v55  ;;  %v1199_v54 = vld [vmem:[%s3851_s1 + $0x3f0] sm:$0xff] }
  0x41   : > { %1337 = vmatpush.msrb.mxu1 %v1097_v56  ;;  %1451 = vmatpush.msrb.mxu2 %v1112_v57  ;;  %v1167_v55 = vld [vmem:[%s3851_s1 + $0x2f0] sm:$0xff]  ;;  %v213_v56 = vld [vmem:[%s2850_s26 + $0x48] sm:$0xff] }
  0x42   : > { %1239 = vmatmul.f32.gmra.mxu0 %v2978_v58  ;;  %1564 = vmatpush.msrb.mxu3 %v1128_v59  ;;  %v3151_v57 = vld [vmem:[%s2850_s26 + $0xb0] sm:$0xff] }
  0x43   : > { %1675 = vmatpush.msrb.mxu0 %v1146_v60  ;;  %1338 = vmatpush.msrb.mxu1 %v1096_v61  ;;  %v3154_v59 = vld [vmem:[%s2850_s26 + $0x110] sm:$0xff] }
  0x44   : > { %1266 = vmatmul.f32.gmra.mxu1 %v2990_v62  ;;  %1290 = vmatmul.f32.gmra.mxu2 %v2993_v63  ;;  %v3157_v60 = vld [vmem:[%s2850_s26 + $0x170] sm:$0xff] }
  0x45   : > { %1452 = vmatpush.msrb.mxu2 %v1111_v0  ;;  %1565 = vmatpush.msrb.mxu3 %v1127_v1  ;;  %v1215_v61 = vld [vmem:[%s3851_s1 + $0x470] sm:$0xff]  ;;  %v271_v1 = vld [vmem:[%s2850_s26 + $0x1] sm:$0xff] }
  0x46   : > { %1314 = vmatmul.f32.gmra.mxu3 %v234_v2  ;;  %1676 = vmatpush.msrb.mxu0 %v1145_v3  ;;  %v214_v0 = vld [vmem:[%s2850_s26 + $0x50] sm:$0xff]  ;;  %v335_v2 = vld [vmem:[%s2850_s26 + $0x2] sm:$0xff] }
  0x47   : > { %1339 = vmatpush.msrb.mxu1 %v1095_v4  ;;  %1453 = vmatpush.msrb.mxu2 %v1110_v5  ;;  %v1182_v3 = vld [vmem:[%s3851_s1 + $0x368] sm:$0xff] }
  0x48   : > { %1566 = vmatpush.msrb.mxu3 %v1126_v6  ;;  %1677 = vmatpush.msrb.mxu0 %v1144_v7  ;;  %v1198_v4 = vld [vmem:[%s3851_s1 + $0x3e8] sm:$0xff]  ;;  %v2497_v6 = vld [vmem:[%s2850_s26 + $0x19] sm:$0xff] }
  0x49   : > { %1340 = vmatpush.msrb.mxu1 %v1094_v8  ;;  %1454 = vmatpush.msrb.mxu2 %v1109_v9  ;;  %v1166_v5 = vld [vmem:[%s3851_s1 + $0x2e8] sm:$0xff] }
  0x4a   : > { %1242 = vmatmul.f32.gmra.mxu0 %v3027_v10  ;;  %1567 = vmatpush.msrb.mxu3 %v1125_v11  ;;  %v272_v7 = vld [vmem:[%s2850_s26 + $0x9] sm:$0xff]  ;;  %v2498_v9 = vld [vmem:[%s2850_s26 + $0x21] sm:$0xff] }
  0x4b   : > { %1678 = vmatpush.msrb.mxu0 %v1143_v12  ;;  %1341 = vmatpush.msrb.mxu1 %v1093_v13  ;;  %v336_v8 = vld [vmem:[%s2850_s26 + $0xa] sm:$0xff]  ;;  %v337_v11 = vld [vmem:[%s2850_s26 + $0x1a] sm:$0xff] }
  0x4c   : > { %1269 = vmatmul.f32.gmra.mxu1 %v3039_v14  ;;  %1293 = vmatmul.f32.gmra.mxu2 %v3042_v15  ;;  %v1181_v12 = vld [vmem:[%s3851_s1 + $0x360] sm:$0xff] }
  0x4d   : > { %1455 = vmatpush.msrb.mxu2 %v1108_v18  ;;  %1568 = vmatpush.msrb.mxu3 %v1124_v19  ;;  %v1165_v13 = vld [vmem:[%s3851_s1 + $0x2e0] sm:$0xff]  ;;  %v3198_v18 = vld [vmem:[%s2850_s26 + $0x31] sm:$0xff] }
  0x4e   : > { %1317 = vmatmul.f32.gmra.mxu3 %v235_v20  ;;  %1679 = vmatpush.msrb.mxu0 %v1142_v21  ;;  %v338_v19 = vld [vmem:[%s2850_s26 + $0x22] sm:$0xff]  ;;  %v3207_v21 = vld [vmem:[%s2850_s26 + $0x39] sm:$0xff] }
  0x4f   : > { %1342 = vmatpush.msrb.mxu1 %v1092_v22  ;;  %1456 = vmatpush.msrb.mxu2 %v1107_v23  ;;  %v1213_v20 = vld [vmem:[%s3851_s1 + $0x460] sm:$0xff]  ;;  %v339_v22 = vld [vmem:[%s2850_s26 + $0x32] sm:$0xff] }
  0x50   : > { %1569 = vmatpush.msrb.mxu3 %v1123_v24  ;;  %1680 = vmatpush.msrb.mxu0 %v1141_v25  ;;  %v1180_v23 = vld [vmem:[%s3851_s1 + $0x358] sm:$0xff]  ;;  %v2501_v25 = vld [vmem:[%s2850_s26 + $0x49] sm:$0xff] }
  0x51   : > { %1343 = vmatpush.msrb.mxu1 %v1091_v26  ;;  %1457 = vmatpush.msrb.mxu2 %v1106_v27  ;;  %v1196_v24 = vld [vmem:[%s3851_s1 + $0x3d8] sm:$0xff] }
  0x52   : > { %1245 = vmatmul.f32.gmra.mxu0 %v3076_v28  ;;  %1570 = vmatpush.msrb.mxu3 %v1122_v29  ;;  %v1164_v26 = vld [vmem:[%s3851_s1 + $0x2d8] sm:$0xff] }
  0x53   : > { %1681 = vmatpush.msrb.mxu0 %v1140_v32  ;;  %1344 = vmatpush.msrb.mxu1 %v1090_v33  ;;  %v340_v27 = vld [vmem:[%s2850_s26 + $0x3a] sm:$0xff]  ;;  %v2502_v29 = vld [vmem:[%s2850_s26 + $0x51] sm:$0xff] }
  0x54   : > { %1272 = vmatmul.f32.gmra.mxu1 %v3088_v34  ;;  %1296 = vmatmul.f32.gmra.mxu2 %v3091_v35  ;;  %v341_v32 = vld [vmem:[%s2850_s26 + $0x4a] sm:$0xff] }
  0x55   : > { %1458 = vmatpush.msrb.mxu2 %v1105_v36  ;;  %1571 = vmatpush.msrb.mxu3 %v1121_v37  ;;  %v1179_v33 = vld [vmem:[%s3851_s1 + $0x350] sm:$0xff]  ;;  %v2503_v37 = vld [vmem:[%s2850_s26 + $0x61] sm:$0xff] }
  0x56   : > { %1320 = vmatmul.f32.gmra.mxu3 %v236_v38  ;;  %1682 = vmatpush.msrb.mxu0 %v1139_v39  ;;  %v1195_v36 = vld [vmem:[%s3851_s1 + $0x3d0] sm:$0xff] }
  0x57   : > { %1345 = vmatpush.msrb.mxu1 %v1089_v40  ;;  %1895 = vmatpush.msra.mxu2 %v1184_v41  ;;  %v1163_v38 = vld [vmem:[%s3851_s1 + $0x2d0] sm:$0xff] }
  0x58   : > { %1683 = vmatpush.msrb.mxu0 %v1138_v42  ;;  %2008 = vmatpush.msra.mxu3 %v1200_v43  ;;  %v342_v39 = vld [vmem:[%s2850_s26 + $0x52] sm:$0xff]  ;;  %v2504_v40 = vld [vmem:[%s2850_s26 + $0x69] sm:$0xff] }
  0x59   : > { %1782 = vmatpush.msra.mxu1 %v1168_v44  ;;  %1896 = vmatpush.msra.mxu2 %v1183_v53  ;;  %v343_v42 = vld [vmem:[%s2850_s26 + $0x62] sm:$0xff]  ;;  %v344_v53 = vld [vmem:[%s2850_s26 + $0x6a] sm:$0xff] }
  0x5a   : > { %1248 = vmatmul.f32.gmra.mxu0 %v3122_v45  ;;  %2009 = vmatpush.msra.mxu3 %v1199_v54  ;;  %v1178_v43 = vld [vmem:[%s3851_s1 + $0x348] sm:$0xff] }
  0x5b   : > { %1684 = vmatpush.msrb.mxu0 %v1137_v48  ;;  %1783 = vmatpush.msra.mxu1 %v1167_v55  ;;  %v2505_v48 = vld [vmem:[%s2850_s26 + $0x79] sm:$0xff]  ;;  %v1210_v54 = vld [vmem:[%s3851_s1 + $0x448] sm:$0xff] }
  0x5c   : > { %1275 = vmatmul.f32.gmra.mxu1 %v3128_v49  ;;  %1299 = vmatmul.f32.gmra.mxu2 %v3131_v50 }
  0x5d   : > { %2121 = vmatpush.msra.mxu0 %v1216_v51  ;;  %1897 = vmatpush.msra.mxu2 %v1182_v3  ;;  %v1162_v51 = vld [vmem:[%s3851_s1 + $0x2c8] sm:$0xff]  ;;  %v1193_v3 = vld [vmem:[%s3851_s1 + $0x3c0] sm:$0xff] }
  0x5e   : > { %1323 = vmatmul.f32.gmra.mxu3 %v237_v52  ;;  %1784 = vmatpush.msra.mxu1 %v1166_v5 }
  0x5f   : > { %2122 = vmatpush.msra.mxu0 %v1215_v61  ;;  %2010 = vmatpush.msra.mxu3 %v1198_v4  ;;  %v2506_v61 = vld [vmem:[%s2850_s26 + $0x81] sm:$0xff] }
  0x60   : > { %1898 = vmatpush.msra.mxu2 %v1181_v12  ;;  %1785 = vmatpush.msra.mxu1 %v1165_v13 }
  0x62   : > { %1251 = vmatmul.f32.gmra.mxu0 %v213_v56  ;;  %1899 = vmatpush.msra.mxu2 %v1180_v23 }
  0x63   : > { %1786 = vmatpush.msra.mxu1 %v1164_v26  ;;  %v1160_v26 = vld [vmem:[%s3851_s1 + $0x2b8] sm:$0xff] }
  0x64   : > { %1278 = vmatmul.f32.gmra.mxu1 %v3151_v57  ;;  %1302 = vmatmul.f32.gmra.mxu2 %v3154_v59 }
  0x65   : > { %1900 = vmatpush.msra.mxu2 %v1179_v33  ;;  %1787 = vmatpush.msra.mxu1 %v1163_v38 }
  0x66   : > { %1326 = vmatmul.f32.gmra.mxu3 %v3157_v60 }
  0x67   : > { %1901 = vmatpush.msra.mxu2 %v1178_v43  ;;  %1788 = vmatpush.msra.mxu1 %v1162_v51  ;;  %v2511_v43 = vld [vmem:[%s2850_s26 + $0xc1] sm:$0xff] }
  0x6a   : > { %1254 = vmatmul.f32.gmra.mxu0 %v214_v0 }
  0x6c   : > { %1346 = vmatmul.f32.vlgmr.msrb.gmra.mxu1 %v271_v1  ;;  %1459 = vmatmul.f32.vlgmr.msrb.gmra.mxu2 %v335_v2  ;;  %v345_v2 = vld [vmem:[%s2850_s26 + $0x7a] sm:$0xff] }
  0x6e   : > { %1572 = vmatmul.f32.vlgmr.msrb.gmra.mxu3 %v2978_v58  ;;  %v1214_v58 = vld [vmem:[%s3851_s1 + $0x468] sm:$0xff] }
  0x6f   : > { %2123 = vmatpush.msra.mxu0 %v1214_v58  ;;  %v346_v58 = vld [vmem:[%s2850_s26 + $0x82] sm:$0xff] }
  0x71   : > { %2124 = vmatpush.msra.mxu0 %v1213_v20  ;;  %v347_v20 = vld [vmem:[%s2850_s26 + $0x92] sm:$0xff] }
  0x72   : > { %1685 = vmatmul.f32.vlgmr.msrb.gmra.mxu0 %v2497_v6 }
  0x74   : > { %1349 = vmatmul.f32.gmra.mxu1 %v272_v7  ;;  %1462 = vmatmul.f32.gmra.mxu2 %v336_v8  ;;  %v1161_v7 = vld [vmem:[%s3851_s1 + $0x2c0] sm:$0xff] }
  0x75   : > { %1789 = vmatpush.msra.mxu1 %v1161_v7 }
  0x76   : > { %1575 = vmatmul.f32.gmra.mxu3 %v3027_v10  ;;  %v1197_v10 = vld [vmem:[%s3851_s1 + $0x3e0] sm:$0xff] }
  0x77   : > { %2011 = vmatpush.msra.mxu3 %v1197_v10  ;;  %v2508_v10 = vld [vmem:[%s2850_s26 + $0x99] sm:$0xff]  ;;  %1790 = vmatpush.msra.mxu1 %v1160_v26 }
  0x79   : > { %2012 = vmatpush.msra.mxu3 %v1196_v24 }
  0x7a   : > { %1688 = vmatmul.f32.gmra.mxu0 %v2498_v9 }
  0x7b   : > { %2013 = vmatpush.msra.mxu3 %v1195_v36  ;;  %v2510_v36 = vld [vmem:[%s2850_s26 + $0xb1] sm:$0xff] }
  0x7c   : > { %1352 = vmatmul.f32.gmra.mxu1 %v2497_v6  ;;  %1465 = vmatmul.f32.gmra.mxu2 %v337_v11  ;;  %v2507_v6 = vld [vmem:[%s2850_s26 + $0x91] sm:$0xff] }
  0x7e   : > { %1578 = vmatmul.f32.gmra.mxu3 %v3076_v28  ;;  %v1212_v28 = vld [vmem:[%s3851_s1 + $0x458] sm:$0xff] }
  0x7f   : > { %2125 = vmatpush.msra.mxu0 %v1212_v28 }
  0x82   : > { %1691 = vmatmul.f32.gmra.mxu0 %v3198_v18 }
  0x84   : > { %1355 = vmatmul.f32.gmra.mxu1 %v2498_v9  ;;  %1468 = vmatmul.f32.gmra.mxu2 %v338_v19  ;;  %v1209_v9 = vld [vmem:[%s3851_s1 + $0x440] sm:$0xff] }
  0x86   : > { %1581 = vmatmul.f32.gmra.mxu3 %v3122_v45 }
  0x8a   : > { %1694 = vmatmul.f32.gmra.mxu0 %v3207_v21 }
  0x8c   : > { %1358 = vmatmul.f32.gmra.mxu1 %v3198_v18  ;;  %1471 = vmatmul.f32.gmra.mxu2 %v339_v22  ;;  %v1192_v22 = vld [vmem:[%s3851_s1 + $0x3b8] sm:$0xff] }
  0x8e   : > { %1584 = vmatmul.f32.gmra.mxu3 %v213_v56 }
  0x92   : > { %1697 = vmatmul.f32.gmra.mxu0 %v2501_v25 }
  0x94   : > { %1361 = vmatmul.f32.gmra.mxu1 %v3207_v21  ;;  %1474 = vmatmul.f32.gmra.mxu2 %v340_v27 }
  0x96   : > { %1587 = vmatmul.f32.gmra.mxu3 %v214_v0 }
  0x9a   : > { %1700 = vmatmul.f32.gmra.mxu0 %v2502_v29 }
  0x9c   : > { %1364 = vmatmul.f32.gmra.mxu1 %v2501_v25  ;;  %1477 = vmatmul.f32.gmra.mxu2 %v341_v32  ;;  %v2509_v25 = vld [vmem:[%s2850_s26 + $0xa9] sm:$0xff] }
  0x9e   : > { %1590 = vmatmul.f32.gmra.mxu3 %v2856_v16  ;;  %v1211_v16 = vld [vmem:[%s3851_s1 + $0x450] sm:$0xff] }
  0x9f   : > { %2126 = vmatpush.msra.mxu0 %v1211_v16  ;;  %v1191_v16 = vld [vmem:[%s3851_s1 + $0x3b0] sm:$0xff] }
  0xa1   : > { %2127 = vmatpush.msra.mxu0 %v1210_v54 }
  0xa2   : > { %1703 = vmatmul.f32.gmra.mxu0 %v2503_v37 }
  0xa3   : > { %2128 = vmatpush.msra.mxu0 %v1209_v9 }
  0xa4   : > { %1367 = vmatmul.f32.gmra.mxu1 %v2502_v29  ;;  %1480 = vmatmul.f32.gmra.mxu2 %v342_v39  ;;  %v1208_v29 = vld [vmem:[%s3851_s1 + $0x438] sm:$0xff]  ;;  %v349_v39 = vld [vmem:[%s2850_s26 + $0xaa] sm:$0xff] }
  0xa5   : > { %2129 = vmatpush.msra.mxu0 %v1208_v29 }
  0xa6   : > { %1593 = vmatmul.f32.gmra.mxu3 %v2896_v30  ;;  %v1194_v30 = vld [vmem:[%s3851_s1 + $0x3c8] sm:$0xff] }
  0xa7   : > { %2014 = vmatpush.msra.mxu3 %v1194_v30  ;;  %v1159_v30 = vld [vmem:[%s3851_s1 + $0x2b0] sm:$0xff] }
  0xa8   : > { %1791 = vmatpush.msra.mxu1 %v1159_v30 }
  0xa9   : > { %v3246_v41 = vpop.f32.mrf.mxu1  ;;  %2015 = vmatpush.msra.mxu3 %v1193_v3 }
  0xaa   : > { %1706 = vmatmul.f32.gmra.mxu0 %v2504_v40 }
  0xab   : > { %2016 = vmatpush.msra.mxu3 %v1192_v22  ;;  %v1158_v22 = vld [vmem:[%s3851_s1 + $0x2a8] sm:$0xff] }
  0xac   : > { %1370 = vmatmul.f32.gmra.mxu1 %v2503_v37  ;;  %1483 = vmatmul.f32.gmra.mxu2 %v343_v42 }
  0xad   : > { %2017 = vmatpush.msra.mxu3 %v1191_v16  ;;  %1792 = vmatpush.msra.mxu1 %v1158_v22  ;;  %v2514_v16 = vld [vmem:[%s2850_s26 + $0xe1] sm:$0xff] }
  0xae   : > { %1596 = vmatmul.f32.gmra.mxu3 %v2942_v46 }
  0xaf   : > { %v3256_v44 = vpop.f32.mrf.mxu2  ;;  %v3258_v45 = vpop.f32.mrf.mxu0 }
  0xb1   : > { %v3264_v52 = vpop.f32.mrf.mxu1  ;;  %v3266_v46 = vpop.f32.mrf.mxu3 }
  0xb2   : > { %1709 = vmatmul.f32.gmra.mxu0 %v2505_v48 }
  0xb4   : > { %1373 = vmatmul.f32.gmra.mxu1 %v2504_v40  ;;  %1486 = vmatmul.f32.gmra.mxu2 %v344_v53  ;;  %v1207_v53 = vld [vmem:[%s3851_s1 + $0x430] sm:$0xff] }
  0xb5   : > { %2130 = vmatpush.msra.mxu0 %v1207_v53  ;;  %v353_v53 = vld [vmem:[%s2850_s26 + $0xda] sm:$0xff] }
  0xb6   : > { %1599 = vmatmul.f32.gmra.mxu3 %v2990_v62  ;;  %v1177_v62 = vld [vmem:[%s3851_s1 + $0x340] sm:$0xff] }
  0xb7   : > { %v3273_v55 = vpop.f32.mrf.mxu2  ;;  %v3275_v56 = vpop.f32.mrf.mxu0  ;;  %1902 = vmatpush.msra.mxu2 %v1177_v62 }
  0xb9   : > { %v3278_v0 = vpop.f32.mrf.mxu1  ;;  %v3280_v1 = vpop.f32.mrf.mxu3 }
  0xba   : > { %1712 = vmatmul.f32.gmra.mxu0 %v2506_v61 }
  0xbc   : > { %1376 = vmatmul.f32.gmra.mxu1 %v2505_v48  ;;  %1489 = vmatmul.f32.gmra.mxu2 %v345_v2  ;;  %v2512_v2 = vld [vmem:[%s2850_s26 + $0xc9] sm:$0xff] }
  0xbe   : > { %1602 = vmatmul.f32.gmra.mxu3 %v3039_v14 }
  0xbf   : > { %v3290_v4 = vpop.f32.mrf.mxu2  ;;  %v3292_v5 = vpop.f32.mrf.mxu0 }
  0xc1   : > { %v3298_v8 = vpop.f32.mrf.mxu1  ;;  %v3300_v14 = vpop.f32.mrf.mxu3 }
  0xc2   : > { %1715 = vmatmul.f32.gmra.mxu0 %v2507_v6 }
  0xc4   : > { %1379 = vmatmul.f32.gmra.mxu1 %v2506_v61  ;;  %1492 = vmatmul.f32.gmra.mxu2 %v346_v58  ;;  %v1190_v58 = vld [vmem:[%s3851_s1 + $0x3a8] sm:$0xff] }
  0xc5   : > { %2018 = vmatpush.msra.mxu3 %v1190_v58  ;;  %v3416_v58 = vld [vmem:[%s2850_s26 + $0xf1] sm:$0xff] }
  0xc6   : > { %1605 = vmatmul.f32.gmra.mxu3 %v3088_v34  ;;  %v1176_v34 = vld [vmem:[%s3851_s1 + $0x338] sm:$0xff] }
  0xc7   : > { %v3307_v11 = vpop.f32.mrf.mxu2  ;;  %v3309_v12 = vpop.f32.mrf.mxu0  ;;  %1903 = vmatpush.msra.mxu2 %v1176_v34 }
  0xc9   : > { %v3312_v13 = vpop.f32.mrf.mxu1  ;;  %v3314_v19 = vpop.f32.mrf.mxu3 }
  0xca   : > { %1718 = vmatmul.f32.gmra.mxu0 %v2508_v10 }
  0xcc   : > { %1382 = vmatmul.f32.gmra.mxu1 %v2507_v6  ;;  %1495 = vmatmul.f32.gmra.mxu2 %v347_v20  ;;  %v351_v6 = vld [vmem:[%s2850_s26 + $0xc2] sm:$0xff]  ;;  %v2513_v20 = vld [vmem:[%s2850_s26 + $0xd9] sm:$0xff] }
  0xce   : > { %1608 = vmatmul.f32.gmra.mxu3 %v3128_v49  ;;  %v348_v49 = vld [vmem:[%s2850_s26 + $0x9a] sm:$0xff] }
  0xcf   : > { %v3324_v23 = vpop.f32.mrf.mxu2  ;;  %v3326_v24 = vpop.f32.mrf.mxu0 }
  0xd1   : > { %v3332_v27 = vpop.f32.mrf.mxu1  ;;  %v3334_v28 = vpop.f32.mrf.mxu3 }
  0xd2   : > { %1721 = vmatmul.f32.gmra.mxu0 %v2509_v25 }
  0xd4   : > { %1385 = vmatmul.f32.gmra.mxu1 %v2508_v10  ;;  %1498 = vmatmul.f32.gmra.mxu2 %v348_v49  ;;  %v352_v49 = vld [vmem:[%s2850_s26 + $0xca] sm:$0xff] }
  0xd6   : > { %1611 = vmatmul.f32.gmra.mxu3 %v3151_v57  ;;  %v1175_v57 = vld [vmem:[%s3851_s1 + $0x330] sm:$0xff] }
  0xd7   : > { %v3341_v32 = vpop.f32.mrf.mxu2  ;;  %v3343_v33 = vpop.f32.mrf.mxu0  ;;  %1904 = vmatpush.msra.mxu2 %v1175_v57 }
  0xd9   : > { %v3346_v37 = vpop.f32.mrf.mxu1  ;;  %v3348_v38 = vpop.f32.mrf.mxu3 }
  0xda   : > { %1724 = vmatmul.f32.gmra.mxu0 %v2510_v36 }
  0xdc   : > { %1388 = vmatmul.f32.gmra.mxu1 %v2509_v25  ;;  %1501 = vmatmul.f32.gmra.mxu2 %v349_v39 }
  0xde   : > { %1614 = vmatmul.f32.gmra.mxu3 %v2859_v17  ;;  %v350_v17 = vld [vmem:[%s2850_s26 + $0xb2] sm:$0xff] }
  0xdf   : > { %v3358_v40 = vpop.f32.mrf.mxu2  ;;  %v3360_v42 = vpop.f32.mrf.mxu0 }
  0xe1   : > { %v3366_v48 = vpop.f32.mrf.mxu1  ;;  %v3368_v51 = vpop.f32.mrf.mxu3 }
  0xe2   : > { %1727 = vmatmul.f32.gmra.mxu0 %v2511_v43 }
  0xe4   : > { %1391 = vmatmul.f32.gmra.mxu1 %v2510_v36  ;;  %1504 = vmatmul.f32.gmra.mxu2 %v350_v17  ;;  %v1206_v36 = vld [vmem:[%s3851_s1 + $0x428] sm:$0xff] }
  0xe5   : > { %2131 = vmatpush.msra.mxu0 %v1206_v36 }
  0xe6   : > { %1617 = vmatmul.f32.gmra.mxu3 %v2899_v31  ;;  %v1174_v31 = vld [vmem:[%s3851_s1 + $0x328] sm:$0xff] }
  0xe7   : > { %v3375_v54 = vpop.f32.mrf.mxu2  ;;  %v3377_v61 = vpop.f32.mrf.mxu0  ;;  %1905 = vmatpush.msra.mxu2 %v1174_v31 }
  0xe9   : > { %v3380_v62 = vpop.f32.mrf.mxu3  ;;  %v1347_v3 = vpop.f32.mrf.mxu1 }
  0xea   : > { %1730 = vmatmul.f32.gmra.mxu0 %v2512_v2  ;;  %v1348_v7 = vadd.f32 %v1347_v3, %v3258_v45 }
  0xec   : > { %1394 = vmatmul.f32.gmra.mxu1 %v2511_v43  ;;  %1507 = vmatmul.f32.gmra.mxu2 %v351_v6  ;;  %v1189_v6 = vld [vmem:[%s3851_s1 + $0x3a0] sm:$0xff] }
  0xed   : > { %2019 = vmatpush.msra.mxu3 %v1189_v6  ;;  %v1156_v6 = vld [vmem:[%s3851_s1 + $0x298] sm:$0xff] }
  0xee   : > { %1620 = vmatmul.f32.gmra.mxu3 %v2945_v47 }
  0xef   : > { %v1460_v9 = vpop.f32.mrf.mxu2  ;;  %v1686_v10 = vpop.f32.mrf.mxu0 }
  0xf0   : > { %v1461_v34 = vadd.f32 %v1460_v9, %v1348_v7 }
  0xf1   : > { %v1350_v25 = vpop.f32.mrf.mxu1  ;;  %v1573_v26 = vpop.f32.mrf.mxu3 }
  0xf2   : > { %v1574_v47 = vadd.f32 %v1573_v26, %v1461_v34  ;;  %1733 = vmatmul.f32.gmra.mxu0 %v2513_v20  ;;  %v1351_v29 = vadd.f32 %v1350_v25, %v3275_v56  ;;  %v1205_v26 = vld [vmem:[%s3851_s1 + $0x420] sm:$0xff] }
  0xf3   : > { %2132 = vmatpush.msra.mxu0 %v1205_v26 }
  0xf4   : > { %v3396_v45 = vadd.f32 %v1686_v10, %v1574_v47  ;;  %1397 = vmatmul.f32.gmra.mxu1 %v2512_v2  ;;  %1510 = vmatmul.f32.gmra.mxu2 %v352_v49  ;;  %v1157_v10 = vld [vmem:[%s3851_s1 + $0x2a0] sm:$0xff] }
  0xf5   : > { %1793 = vmatpush.msra.mxu1 %v1157_v10 }
  0xf6   : > { %1623 = vmatmul.f32.gmra.mxu3 %v2993_v63  ;;  %v1173_v63 = vld [vmem:[%s3851_s1 + $0x320] sm:$0xff] }
  0xf7   : > { %v1463_v39 = vpop.f32.mrf.mxu2  ;;  %v1689_v57 = vpop.f32.mrf.mxu0  ;;  %1906 = vmatpush.msra.mxu2 %v1173_v63  ;;  %v2517_v63 = vld [vmem:[%s2850_s26 + $0x109] sm:$0xff]  ;;  %1794 = vmatpush.msra.mxu1 %v1156_v6 }
  0xf8   : > { %v1464_v43 = vadd.f32 %v1463_v39, %v1351_v29  ;;  %v2516_v29 = vld [vmem:[%s2850_s26 + $0xf9] sm:$0xff] }
  0xf9   : > { %v1353_v30 = vpop.f32.mrf.mxu1  ;;  %v1576_v17 = vpop.f32.mrf.mxu3 }
  0xfa   : > { %v1577_v3 = vadd.f32 %v1576_v17, %v1464_v43  ;;  %1736 = vmatmul.f32.gmra.mxu0 %v2514_v16  ;;  %v1354_v56 = vadd.f32 %v1353_v30, %v3292_v5  ;;  %v354_v5 = vld [vmem:[%s2850_s26 + $0xe2] sm:$0xff]  ;;  %v355_v43 = vld [vmem:[%s2850_s26 + $0xf2] sm:$0xff] }
  0xfb   : > { %v1188_v17 = vld [vmem:[%s3851_s1 + $0x398] sm:$0xff] }
  0xfc   : > { %v3405_v2 = vadd.f32 %v1689_v57, %v1577_v3  ;;  %1400 = vmatmul.f32.gmra.mxu1 %v2513_v20  ;;  %1513 = vmatmul.f32.gmra.mxu2 %v353_v53 }
  0xfd   : > { %2020 = vmatpush.msra.mxu3 %v1188_v17  ;;  %v1155_v17 = vld [vmem:[%s3851_s1 + $0x290] sm:$0xff] }
  0xfe   : > { %1626 = vmatmul.f32.gmra.mxu3 %v3042_v15  ;;  %1795 = vmatpush.msra.mxu1 %v1155_v17  ;;  %v2490_v17 = vld [vmem:[%s2850_s26 + $0x140] sm:$0xff] }
  0xff   : > { %v1466_v31 = vpop.f32.mrf.mxu2  ;;  %v1692_v7 = vpop.f32.mrf.mxu0 }
 0x100   : > { %v1467_v9 = vadd.f32 %v1466_v31, %v1354_v56 }
 0x101   : > { %v1356_v20 = vpop.f32.mrf.mxu1  ;;  %v1579_v34 = vpop.f32.mrf.mxu3 }
 0x102   : > { %v1580_v15 = vadd.f32 %v1579_v34, %v1467_v9  ;;  %1739 = vmatmul.f32.gmra.mxu0 %v3416_v58  ;;  %v1357_v25 = vadd.f32 %v1356_v20, %v3309_v12  ;;  %v356_v9 = vld [vmem:[%s2850_s26 + $0xfa] sm:$0xff] }
 0x103   : > { %v1204_v20 = vld [vmem:[%s3851_s1 + $0x418] sm:$0xff] }
 0x104   : > { %v3423_v22 = vadd.f32 %v1692_v7, %v1580_v15  ;;  %1403 = vmatmul.f32.gmra.mxu1 %v2514_v16  ;;  %1516 = vmatmul.f32.gmra.mxu2 %v354_v5  ;;  %v2518_v15 = vld [vmem:[%s2850_s26 + $0x111] sm:$0xff] }
 0x105   : > { %2133 = vmatpush.msra.mxu0 %v1204_v20 }
 0x106   : > { %1629 = vmatmul.f32.gmra.mxu3 %v3091_v35  ;;  %v1172_v35 = vld [vmem:[%s3851_s1 + $0x318] sm:$0xff] }
 0x107   : > { %v1469_v49 = vpop.f32.mrf.mxu2  ;;  %v1695_v47 = vpop.f32.mrf.mxu0  ;;  %1907 = vmatpush.msra.mxu2 %v1172_v35  ;;  %v2519_v35 = vld [vmem:[%s2850_s26 + $0x121] sm:$0xff] }
 0x108   : > { %v1470_v36 = vadd.f32 %v1469_v49, %v1357_v25 }
 0x109   : > { %v1359_v39 = vpop.f32.mrf.mxu1  ;;  %v1582_v57 = vpop.f32.mrf.mxu3 }
 0x10a   : > { %v1583_v30 = vadd.f32 %v1582_v57, %v1470_v36  ;;  %1742 = vmatmul.f32.gmra.mxu0 %v2516_v29  ;;  %v1360_v12 = vadd.f32 %v1359_v39, %v3326_v24  ;;  %v1187_v57 = vld [vmem:[%s3851_s1 + $0x390] sm:$0xff] }
 0x10b   : > { %2021 = vmatpush.msra.mxu3 %v1187_v57 }
 0x10c   : > { %v3432_v16 = vadd.f32 %v1695_v47, %v1583_v30  ;;  %1406 = vmatmul.f32.gmra.mxu1 %v3416_v58  ;;  %1519 = vmatmul.f32.gmra.mxu2 %v355_v43  ;;  %v357_v47 = vld [vmem:[%s2850_s26 + $0x10a] sm:$0xff] }
 0x10e   : > { %1632 = vmatmul.f32.gmra.mxu3 %v3131_v50 }
 0x10f   : > { %v1472_v53 = vpop.f32.mrf.mxu2  ;;  %v1698_v3 = vpop.f32.mrf.mxu0 }
 0x110   : > { %v1473_v56 = vadd.f32 %v1472_v53, %v1360_v12 }
 0x111   : > { %v1362_v31 = vpop.f32.mrf.mxu1  ;;  %v1585_v7 = vpop.f32.mrf.mxu3 }
 0x112   : > { %v1586_v50 = vadd.f32 %v1585_v7, %v1473_v56  ;;  %1745 = vmatmul.f32.gmra.mxu0 %v2517_v63  ;;  %v1363_v10 = vadd.f32 %v1362_v31, %v3343_v33  ;;  %v2488_v56 = vld [vmem:[%s2850_s26 + $0x128] sm:$0xff]  ;;  %v1203_v7 = vld [vmem:[%s3851_s1 + $0x410] sm:$0xff] }
 0x113   : > { %2134 = vmatpush.msra.mxu0 %v1203_v7 }
 0x114   : > { %v3448_v24 = vadd.f32 %v1698_v3, %v1586_v50  ;;  %1409 = vmatmul.f32.gmra.mxu1 %v2516_v29  ;;  %1522 = vmatmul.f32.gmra.mxu2 %v356_v9  ;;  %v2487_v29 = vld [vmem:[%s2850_s26 + $0x120] sm:$0xff] }
 0x116   : > { %1635 = vmatmul.f32.gmra.mxu3 %v3154_v59  ;;  %v1171_v59 = vld [vmem:[%s3851_s1 + $0x310] sm:$0xff] }
 0x117   : > { %v1475_v34 = vpop.f32.mrf.mxu2  ;;  %v1701_v5 = vpop.f32.mrf.mxu0  ;;  %1908 = vmatpush.msra.mxu2 %v1171_v59 }
 0x118   : > { %v1476_v25 = vadd.f32 %v1475_v34, %v1363_v10  ;;  %v2520_v10 = vld [vmem:[%s2850_s26 + $0x129] sm:$0xff] }
 0x119   : > { %v1365_v26 = vpop.f32.mrf.mxu1  ;;  %v1588_v49 = vpop.f32.mrf.mxu3 }
 0x11a   : > { %v1589_v36 = vadd.f32 %v1588_v49, %v1476_v25  ;;  %1748 = vmatmul.f32.gmra.mxu0 %v2518_v15  ;;  %v1366_v33 = vadd.f32 %v1365_v26, %v3360_v42  ;;  %v359_v25 = vld [vmem:[%s2850_s26 + $0x122] sm:$0xff] }
 0x11c   : > { %v3458_v39 = vadd.f32 %v1701_v5, %v1589_v36  ;;  %1412 = vmatmul.f32.gmra.mxu1 %v2517_v63  ;;  %1525 = vmatmul.f32.gmra.mxu2 %v357_v47  ;;  %v358_v63 = vld [vmem:[%s2850_s26 + $0x112] sm:$0xff]  ;;  %v1186_v36 = vld [vmem:[%s3851_s1 + $0x388] sm:$0xff] }
 0x11d   : > { %2022 = vmatpush.msra.mxu3 %v1186_v36 }
 0x11e   : > { %1638 = vmatmul.f32.gmra.mxu3 %v2487_v29 }
 0x11f   : > { %v1478_v43 = vpop.f32.mrf.mxu2  ;;  %v1704_v30 = vpop.f32.mrf.mxu0 }
 0x120   : > { %v1479_v12 = vadd.f32 %v1478_v43, %v1366_v33  ;;  %v2521_v33 = vld [vmem:[%s2850_s26 + $0x139] sm:$0xff]  ;;  %v1154_v43 = vld [vmem:[%s3851_s1 + $0x288] sm:$0xff] }
 0x121   : > { %v1368_v53 = vpop.f32.mrf.mxu1  ;;  %v1591_v3 = vpop.f32.mrf.mxu3  ;;  %1796 = vmatpush.msra.mxu1 %v1154_v43  ;;  %v2492_v43 = vld [vmem:[%s2850_s26 + $0x158] sm:$0xff] }
 0x122   : > { %v1592_v42 = vadd.f32 %v1591_v3, %v1479_v12  ;;  %1751 = vmatmul.f32.gmra.mxu0 %v2519_v35  ;;  %v1369_v31 = vadd.f32 %v1368_v53, %v3377_v61  ;;  %v1170_v61 = vld [vmem:[%s3851_s1 + $0x308] sm:$0xff] }
 0x123   : > { %1909 = vmatpush.msra.mxu2 %v1170_v61  ;;  %v360_v12 = vld [vmem:[%s2850_s26 + $0x12a] sm:$0xff] }
 0x124   : > { %v3473_v6 = vadd.f32 %v1704_v30, %v1592_v42  ;;  %1415 = vmatmul.f32.gmra.mxu1 %v2518_v15  ;;  %1528 = vmatmul.f32.gmra.mxu2 %v358_v63  ;;  %v2489_v15 = vld [vmem:[%s2850_s26 + $0x138] sm:$0xff]  ;;  %v1202_v63 = vld [vmem:[%s3851_s1 + $0x408] sm:$0xff] }
 0x125   : > { %2135 = vmatpush.msra.mxu0 %v1202_v63 }
 0x126   : > { %1641 = vmatmul.f32.gmra.mxu3 %v2488_v56 }
 0x127   : > { %v1481_v9 = vpop.f32.mrf.mxu2  ;;  %v1707_v50 = vpop.f32.mrf.mxu0 }
 0x128   : > { %v1482_v20 = vadd.f32 %v1481_v9, %v1369_v31  ;;  %v2522_v31 = vld [vmem:[%s2850_s26 + $0x141] sm:$0xff] }
 0x129   : > { %v1371_v34 = vpop.f32.mrf.mxu1  ;;  %v1594_v5 = vpop.f32.mrf.mxu3 }
 0x12a   : > { %v1595_v26 = vadd.f32 %v1594_v5, %v1482_v20  ;;  %1754 = vmatmul.f32.gmra.mxu0 %v2520_v10  ;;  %v1372_v47 = vadd.f32 %v1371_v34, %v3246_v41  ;;  %v361_v20 = vld [vmem:[%s2850_s26 + $0x13a] sm:$0xff] }
 0x12c   : > { %v3482_v49 = vadd.f32 %v1707_v50, %v1595_v26  ;;  %1418 = vmatmul.f32.gmra.mxu1 %v2519_v35  ;;  %1531 = vmatmul.f32.gmra.mxu2 %v359_v25  ;;  %v1185_v26 = vld [vmem:[%s3851_s1 + $0x380] sm:$0xff] }
 0x12d   : > { %2023 = vmatpush.msra.mxu3 %v1185_v26 }
 0x12e   : > { %1644 = vmatmul.f32.gmra.mxu3 %v2489_v15 }
 0x12f   : > { %v1484_v29 = vpop.f32.mrf.mxu2  ;;  %v1710_v59 = vpop.f32.mrf.mxu0 }
 0x130   : > { %v1485_v57 = vadd.f32 %v1484_v29, %v1372_v47  ;;  %v2523_v47 = vld [vmem:[%s2850_s26 + $0x151] sm:$0xff]  ;;  %v1153_v29 = vld [vmem:[%s3851_s1 + $0x280] sm:$0xff] }
 0x131   : > { %v1374_v30 = vpop.f32.mrf.mxu1  ;;  %v1597_v35 = vpop.f32.mrf.mxu3  ;;  %1797 = vmatpush.msra.mxu1 %v1153_v29 }
 0x132   : > { %v1598_v41 = vadd.f32 %v1597_v35, %v1485_v57  ;;  %1757 = vmatmul.f32.gmra.mxu0 %v2521_v33  ;;  %v1375_v3 = vadd.f32 %v1374_v30, %v3264_v52  ;;  %v1169_v52 = vld [vmem:[%s3851_s1 + $0x300] sm:$0xff] }
 0x133   : > { %1910 = vmatpush.msra.mxu2 %v1169_v52  ;;  %v362_v57 = vld [vmem:[%s2850_s26 + $0x142] sm:$0xff] }
 0x134   : > { %v3497_v53 = vadd.f32 %v1710_v59, %v1598_v41  ;;  %1421 = vmatmul.f32.gmra.mxu1 %v2520_v10  ;;  %1534 = vmatmul.f32.gmra.mxu2 %v360_v12  ;;  %v2491_v10 = vld [vmem:[%s2850_s26 + $0x150] sm:$0xff]  ;;  %v1201_v12 = vld [vmem:[%s3851_s1 + $0x400] sm:$0xff] }
 0x135   : > { %2136 = vmatpush.msra.mxu0 %v1201_v12  ;;  %v2495_v12 = vld [vmem:[%s2850_s26 + $0x180] sm:$0xff] }
 0x136   : > { %1647 = vmatmul.f32.gmra.mxu3 %v2490_v17 }
 0x137   : > { %v1487_v42 = vpop.f32.mrf.mxu2  ;;  %v1713_v56 = vpop.f32.mrf.mxu0 }
 0x138   : > { %v1488_v7 = vadd.f32 %v1487_v42, %v1375_v3  ;;  %v2524_v3 = vld [vmem:[%s2850_s26 + $0x159] sm:$0xff] }
 0x139   : > { %v1377_v9 = vpop.f32.mrf.mxu1  ;;  %v1600_v50 = vpop.f32.mrf.mxu3 }
 0x13a   : > { %v1601_v34 = vadd.f32 %v1600_v50, %v1488_v7  ;;  %1760 = vmatmul.f32.gmra.mxu0 %v2522_v31  ;;  %v1378_v25 = vadd.f32 %v1377_v9, %v3278_v0  ;;  %v363_v7 = vld [vmem:[%s2850_s26 + $0x152] sm:$0xff] }
 0x13c   : > { %v3506_v5 = vadd.f32 %v1713_v56, %v1601_v34  ;;  %1424 = vmatmul.f32.gmra.mxu1 %v2521_v33  ;;  %1537 = vmatmul.f32.gmra.mxu2 %v361_v20 }
 0x13e   : > { %1650 = vmatmul.f32.gmra.mxu3 %v2491_v10  ;;  %v2525_v10 = vld [vmem:[%s2850_s26 + $0x169] sm:$0xff] }
 0x13f   : > { %v1490_v15 = vpop.f32.mrf.mxu2  ;;  %v1716_v61 = vpop.f32.mrf.mxu0 }
 0x140   : > { %v1491_v36 = vadd.f32 %v1490_v15, %v1378_v25  ;;  %v364_v15 = vld [vmem:[%s2850_s26 + $0x15a] sm:$0xff] }
 0x141   : > { %v1380_v59 = vpop.f32.mrf.mxu1  ;;  %v1603_v33 = vpop.f32.mrf.mxu3 }
 0x142   : > { %v1604_v0 = vadd.f32 %v1603_v33, %v1491_v36  ;;  %1763 = vmatmul.f32.gmra.mxu0 %v2523_v47  ;;  %v1381_v35 = vadd.f32 %v1380_v59, %v3298_v8  ;;  %v2526_v59 = vld [vmem:[%s2850_s26 + $0x171] sm:$0xff] }
 0x144   : > { %v3521_v30 = vadd.f32 %v1716_v61, %v1604_v0  ;;  %1427 = vmatmul.f32.gmra.mxu1 %v2522_v31  ;;  %1540 = vmatmul.f32.gmra.mxu2 %v362_v57  ;;  %v2493_v31 = vld [vmem:[%s2850_s26 + $0x168] sm:$0xff] }
 0x146   : > { %1653 = vmatmul.f32.gmra.mxu3 %v2492_v43  ;;  %v365_v43 = vld [vmem:[%s2850_s26 + $0x16a] sm:$0xff] }
 0x147   : > { %v1493_v41 = vpop.f32.mrf.mxu2  ;;  %v1719_v17 = vpop.f32.mrf.mxu0 }
 0x148   : > { %v1494_v63 = vadd.f32 %v1493_v41, %v1381_v35 }
 0x149   : > { %v1383_v42 = vpop.f32.mrf.mxu1  ;;  %v1606_v56 = vpop.f32.mrf.mxu3 }
 0x14a   : > { %v1607_v9 = vadd.f32 %v1606_v56, %v1494_v63  ;;  %1766 = vmatmul.f32.gmra.mxu0 %v2524_v3  ;;  %v1384_v8 = vadd.f32 %v1383_v42, %v3312_v13 }
 0x14c   : > { %v3530_v50 = vadd.f32 %v1719_v17, %v1607_v9  ;;  %1430 = vmatmul.f32.gmra.mxu1 %v2523_v47  ;;  %1543 = vmatmul.f32.gmra.mxu2 %v363_v7  ;;  %v366_v7 = vld [vmem:[%s2850_s26 + $0x172] sm:$0xff] }
 0x14e   : > { %1656 = vmatmul.f32.gmra.mxu3 %v2493_v31  ;;  %v2496_v31 = vld [vmem:[%s2850_s26 + $0x188] sm:$0xff] }
 0x14f   : > { %v1496_v20 = vpop.f32.mrf.mxu2  ;;  %v1722_v34 = vpop.f32.mrf.mxu0 }
 0x150   : > { %v1497_v52 = vadd.f32 %v1496_v20, %v1384_v8 }
 0x151   : > { %v1386_v25 = vpop.f32.mrf.mxu1  ;;  %v1609_v26 = vpop.f32.mrf.mxu3 }
 0x152   : > { %v1610_v61 = vadd.f32 %v1609_v26, %v1497_v52  ;;  %1769 = vmatmul.f32.gmra.mxu0 %v2525_v10  ;;  %v1387_v47 = vadd.f32 %v1386_v25, %v3332_v27 }
 0x154   : > { %v3535_v36 = vadd.f32 %v1722_v34, %v1610_v61  ;;  %1433 = vmatmul.f32.gmra.mxu1 %v2524_v3  ;;  %1546 = vmatmul.f32.gmra.mxu2 %v364_v15  ;;  %v2527_v3 = vld [vmem:[%s2850_s26 + $0x181] sm:$0xff]  ;;  %v2561_v61 = vld [vmem:[%s2850_s26 + $0x30] sm:$0xff] }
 0x155   : > { %v2529_v15 = vld [vmem:[%s2850_s26 + $0x1a] sm:$0xff] }
 0x156   : > { %1659 = vmatmul.f32.gmra.mxu3 %v3157_v60 }
 0x157   : > { %v1499_v13 = vpop.f32.mrf.mxu2  ;;  %v1725_v29 = vpop.f32.mrf.mxu0 }
 0x158   : > { %v1500_v33 = vadd.f32 %v1499_v13, %v1387_v47 }
 0x159   : > { %v1389_v57 = vpop.f32.mrf.mxu1  ;;  %v1612_v0 = vpop.f32.mrf.mxu3 }
 0x15a   : > { %v1613_v35 = vadd.f32 %v1612_v0, %v1500_v33  ;;  %1772 = vmatmul.f32.gmra.mxu0 %v2526_v59  ;;  %v1390_v27 = vadd.f32 %v1389_v57, %v3346_v37  ;;  %v2625_v33 = vld [vmem:[%s2850_s26 + $0x32] sm:$0xff] }
 0x15c   : > { %v3542_v41 = vadd.f32 %v1725_v29, %v1613_v35  ;;  %1436 = vmatmul.f32.gmra.mxu1 %v2525_v10  ;;  %1549 = vmatmul.f32.gmra.mxu2 %v365_v43  ;;  %v2528_v10 = vld [vmem:[%s2850_s26 + $0x189] sm:$0xff] }
 0x15d   : > { %v2530_v35 = vld [vmem:[%s2850_s26 + $0x22] sm:$0xff] }
 0x15e   : > { %1662 = vmatmul.f32.gmra.mxu3 %v2495_v12  ;;  %v2562_v12 = vld [vmem:[%s2850_s26 + $0x38] sm:$0xff] }
 0x15f   : > { %v1502_v60 = vpop.f32.mrf.mxu2  ;;  %v1728_v17 = vpop.f32.mrf.mxu0 }
 0x160   : > { %v1503_v63 = vadd.f32 %v1502_v60, %v1390_v27 }
 0x161   : > { %v1392_v42 = vpop.f32.mrf.mxu1  ;;  %v1615_v56 = vpop.f32.mrf.mxu3 }
 0x162   : > { %v1616_v9 = vadd.f32 %v1615_v56, %v1503_v63  ;;  %1775 = vmatmul.f32.gmra.mxu0 %v2527_v3  ;;  %v1393_v37 = vadd.f32 %v1392_v42, %v3366_v48  ;;  %v2626_v3 = vld [vmem:[%s2850_s26 + $0x3a] sm:$0xff] }
 0x164   : > { %v3548_v8 = vadd.f32 %v1728_v17, %v1616_v9  ;;  %1439 = vmatmul.f32.gmra.mxu1 %v2526_v59  ;;  %1552 = vmatmul.f32.gmra.mxu2 %v366_v7  ;;  %v2563_v7 = vld [vmem:[%s2850_s26 + $0x48] sm:$0xff] }
 0x166   : > { %1665 = vmatmul.f32.gmra.mxu3 %v2496_v31  ;;  %v2595_v31 = vld [vmem:[%s2850_s26 + $0x49] sm:$0xff] }
 0x167   : > { %v1505_v20 = vpop.f32.mrf.mxu2  ;;  %v1731_v34 = vpop.f32.mrf.mxu0 }
 0x168   : > { %v1506_v52 = vadd.f32 %v1505_v20, %v1393_v37 }
 0x169   : > { %v1395_v25 = vpop.f32.mrf.mxu1  ;;  %v1618_v26 = vpop.f32.mrf.mxu3 }
 0x16a   : > { %v1619_v47 = vadd.f32 %v1618_v26, %v1506_v52  ;;  %1778 = vmatmul.f32.gmra.mxu0 %v2528_v10  ;;  %v1396_v48 = vadd.f32 %v1395_v25, %v3256_v44  ;;  %v2564_v26 = vld [vmem:[%s2850_s26 + $0x50] sm:$0xff] }
 0x16c   : > { %v3554_v13 = vadd.f32 %v1731_v34, %v1619_v47  ;;  %1798 = vmatmul.f32.vlgmr.msra.gmra.mxu1 %v2529_v15  ;;  %1911 = vmatmul.f32.vlgmr.msra.gmra.mxu2 %v2561_v61  ;;  %v2627_v34 = vld [vmem:[%s2850_s26 + $0x4a] sm:$0xff] }
 0x16d   : > { %v2596_v61 = vld [vmem:[%s2850_s26 + $0x51] sm:$0xff] }
 0x16e   : > { %2024 = vmatmul.f32.vlgmr.msra.gmra.mxu3 %v3198_v18 }
 0x16f   : > { %v1508_v29 = vpop.f32.mrf.mxu2  ;;  %v1734_v59 = vpop.f32.mrf.mxu0 }
 0x170   : > { %v1509_v57 = vadd.f32 %v1508_v29, %v1396_v48 }
 0x171   : > { %v1398_v0 = vpop.f32.mrf.mxu1  ;;  %v1621_v43 = vpop.f32.mrf.mxu3 }
 0x172   : > { %v1622_v27 = vadd.f32 %v1621_v43, %v1509_v57  ;;  %2137 = vmatmul.f32.vlgmr.msra.gmra.mxu0 %v2625_v33  ;;  %v1399_v44 = vadd.f32 %v1398_v0, %v3273_v55  ;;  %v2565_v43 = vld [vmem:[%s2850_s26 + $0x60] sm:$0xff] }
 0x174   : > { %v3561_v60 = vadd.f32 %v1734_v59, %v1622_v27  ;;  %1801 = vmatmul.f32.gmra.mxu1 %v2530_v35  ;;  %1914 = vmatmul.f32.gmra.mxu2 %v2562_v12  ;;  %v2628_v59 = vld [vmem:[%s2850_s26 + $0x52] sm:$0xff]  ;;  %v2597_v12 = vld [vmem:[%s2850_s26 + $0x61] sm:$0xff] }
 0x176   : > { %2027 = vmatmul.f32.gmra.mxu3 %v3207_v21 }
 0x177   : > { %v1511_v18 = vpop.f32.mrf.mxu2  ;;  %v1737_v17 = vpop.f32.mrf.mxu0 }
 0x178   : > { %v1512_v63 = vadd.f32 %v1511_v18, %v1399_v44 }
 0x179   : > { %v1401_v42 = vpop.f32.mrf.mxu1  ;;  %v1624_v56 = vpop.f32.mrf.mxu3 }
 0x17a   : > { %v1625_v9 = vadd.f32 %v1624_v56, %v1512_v63  ;;  %2140 = vmatmul.f32.gmra.mxu0 %v2626_v3  ;;  %v1402_v55 = vadd.f32 %v1401_v42, %v3290_v4  ;;  %v2566_v56 = vld [vmem:[%s2850_s26 + $0x68] sm:$0xff] }
 0x17c   : > { %v3568_v37 = vadd.f32 %v1737_v17, %v1625_v9  ;;  %1804 = vmatmul.f32.gmra.mxu1 %v2625_v33  ;;  %1917 = vmatmul.f32.gmra.mxu2 %v2563_v7  ;;  %v2629_v17 = vld [vmem:[%s2850_s26 + $0x62] sm:$0xff] }
 0x17d   : > { %v2598_v9 = vld [vmem:[%s2850_s26 + $0x69] sm:$0xff] }
 0x17e   : > { %2030 = vmatmul.f32.gmra.mxu3 %v2595_v31 }
 0x17f   : > { %v1514_v21 = vpop.f32.mrf.mxu2  ;;  %v1740_v20 = vpop.f32.mrf.mxu0 }
 0x180   : > { %v1515_v10 = vadd.f32 %v1514_v21, %v1402_v55 }
 0x181   : > { %v1404_v52 = vpop.f32.mrf.mxu1  ;;  %v1627_v25 = vpop.f32.mrf.mxu3 }
 0x182   : > { %v1628_v15 = vadd.f32 %v1627_v25, %v1515_v10  ;;  %2143 = vmatmul.f32.gmra.mxu0 %v2627_v34  ;;  %v1405_v4 = vadd.f32 %v1404_v52, %v3307_v11  ;;  %v2567_v25 = vld [vmem:[%s2850_s26 + $0x78] sm:$0xff] }
 0x184   : > { %v3574_v47 = vadd.f32 %v1740_v20, %v1628_v15  ;;  %1807 = vmatmul.f32.gmra.mxu1 %v2626_v3  ;;  %1920 = vmatmul.f32.gmra.mxu2 %v2564_v26  ;;  %v2630_v20 = vld [vmem:[%s2850_s26 + $0x6a] sm:$0xff]  ;;  %v2599_v15 = vld [vmem:[%s2850_s26 + $0x79] sm:$0xff] }
 0x186   : > { %2033 = vmatmul.f32.gmra.mxu3 %v2596_v61 }
 0x187   : > { %v1517_v48 = vpop.f32.mrf.mxu2  ;;  %v1743_v29 = vpop.f32.mrf.mxu0 }
 0x188   : > { %v1518_v33 = vadd.f32 %v1517_v48, %v1405_v4 }
 0x189   : > { %v1407_v57 = vpop.f32.mrf.mxu1  ;;  %v1630_v0 = vpop.f32.mrf.mxu3 }
 0x18a   : > { %v1631_v35 = vadd.f32 %v1630_v0, %v1518_v33  ;;  %2146 = vmatmul.f32.gmra.mxu0 %v2628_v59  ;;  %v1408_v11 = vadd.f32 %v1407_v57, %v3324_v23  ;;  %v2568_v0 = vld [vmem:[%s2850_s26 + $0x80] sm:$0xff] }
 0x18c   : > { %v3580_v27 = vadd.f32 %v1743_v29, %v1631_v35  ;;  %1810 = vmatmul.f32.gmra.mxu1 %v2627_v34  ;;  %1923 = vmatmul.f32.gmra.mxu2 %v2565_v43  ;;  %v2631_v29 = vld [vmem:[%s2850_s26 + $0x7a] sm:$0xff] }
 0x18d   : > { %v2600_v35 = vld [vmem:[%s2850_s26 + $0x81] sm:$0xff] }
 0x18e   : > { %2036 = vmatmul.f32.gmra.mxu3 %v2597_v12 }
 0x18f   : > { %v1520_v44 = vpop.f32.mrf.mxu2  ;;  %v1746_v18 = vpop.f32.mrf.mxu0 }
 0x190   : > { %v1521_v3 = vadd.f32 %v1520_v44, %v1408_v11 }
 0x191   : > { %v1410_v63 = vpop.f32.mrf.mxu1  ;;  %v1633_v42 = vpop.f32.mrf.mxu3 }
 0x192   : > { %v1634_v7 = vadd.f32 %v1633_v42, %v1521_v3  ;;  %2149 = vmatmul.f32.gmra.mxu0 %v2629_v17  ;;  %v1411_v23 = vadd.f32 %v1410_v63, %v3341_v32  ;;  %v2569_v42 = vld [vmem:[%s2850_s26 + $0x90] sm:$0xff] }
 0x194   : > { %v3586_v31 = vadd.f32 %v1746_v18, %v1634_v7  ;;  %1813 = vmatmul.f32.gmra.mxu1 %v2628_v59  ;;  %1926 = vmatmul.f32.gmra.mxu2 %v2566_v56  ;;  %v2632_v18 = vld [vmem:[%s2850_s26 + $0x82] sm:$0xff]  ;;  %v2601_v7 = vld [vmem:[%s2850_s26 + $0x91] sm:$0xff] }
 0x196   : > { %2039 = vmatmul.f32.gmra.mxu3 %v2598_v9 }
 0x197   : > { %v1523_v55 = vpop.f32.mrf.mxu2  ;;  %v1749_v21 = vpop.f32.mrf.mxu0 }
 0x198   : > { %v1524_v34 = vadd.f32 %v1523_v55, %v1411_v23 }
 0x199   : > { %v1413_v10 = vpop.f32.mrf.mxu1  ;;  %v1636_v52 = vpop.f32.mrf.mxu3 }
 0x19a   : > { %v1637_v26 = vadd.f32 %v1636_v52, %v1524_v34  ;;  %2152 = vmatmul.f32.gmra.mxu0 %v2630_v20  ;;  %v1414_v32 = vadd.f32 %v1413_v10, %v3358_v40  ;;  %v2570_v52 = vld [vmem:[%s2850_s26 + $0x98] sm:$0xff] }
 0x19c   : > { %v3592_v61 = vadd.f32 %v1749_v21, %v1637_v26  ;;  %1816 = vmatmul.f32.gmra.mxu1 %v2629_v17  ;;  %1929 = vmatmul.f32.gmra.mxu2 %v2567_v25  ;;  %v2633_v21 = vld [vmem:[%s2850_s26 + $0x92] sm:$0xff] }
 0x19d   : > { %v2602_v26 = vld [vmem:[%s2850_s26 + $0x99] sm:$0xff] }
 0x19e   : > { %2042 = vmatmul.f32.gmra.mxu3 %v2599_v15 }
 0x19f   : > { %v1526_v4 = vpop.f32.mrf.mxu2  ;;  %v1752_v48 = vpop.f32.mrf.mxu0 }
 0x1a0   : > { %v1527_v59 = vadd.f32 %v1526_v4, %v1414_v32 }
 0x1a1   : > { %v1416_v33 = vpop.f32.mrf.mxu1  ;;  %v1639_v57 = vpop.f32.mrf.mxu3 }
 0x1a2   : > { %v1640_v43 = vadd.f32 %v1639_v57, %v1527_v59  ;;  %2155 = vmatmul.f32.gmra.mxu0 %v2631_v29  ;;  %v1417_v40 = vadd.f32 %v1416_v33, %v3375_v54  ;;  %v2571_v57 = vld [vmem:[%s2850_s26 + $0xa8] sm:$0xff] }
 0x1a4   : > { %v3598_v12 = vadd.f32 %v1752_v48, %v1640_v43  ;;  %1819 = vmatmul.f32.gmra.mxu1 %v2630_v20  ;;  %1932 = vmatmul.f32.gmra.mxu2 %v2568_v0  ;;  %v2634_v48 = vld [vmem:[%s2850_s26 + $0x9a] sm:$0xff]  ;;  %v2603_v43 = vld [vmem:[%s2850_s26 + $0xa9] sm:$0xff] }
 0x1a6   : > { %2045 = vmatmul.f32.gmra.mxu3 %v2600_v35 }
 0x1a7   : > { %v1529_v11 = vpop.f32.mrf.mxu2  ;;  %v1755_v44 = vpop.f32.mrf.mxu0 }
 0x1a8   : > { %v1530_v17 = vadd.f32 %v1529_v11, %v1417_v40 }
 0x1a9   : > { %v1419_v3 = vpop.f32.mrf.mxu1  ;;  %v1642_v63 = vpop.f32.mrf.mxu3 }
 0x1aa   : > { %v1643_v56 = vadd.f32 %v1642_v63, %v1530_v17  ;;  %2158 = vmatmul.f32.gmra.mxu0 %v2632_v18  ;;  %v1420_v54 = vadd.f32 %v1419_v3, %v3266_v46  ;;  %v2572_v63 = vld [vmem:[%s2850_s26 + $0xb0] sm:$0xff] }
 0x1ac   : > { %v3604_v9 = vadd.f32 %v1755_v44, %v1643_v56  ;;  %1822 = vmatmul.f32.gmra.mxu1 %v2631_v29  ;;  %1935 = vmatmul.f32.gmra.mxu2 %v2569_v42  ;;  %v2635_v44 = vld [vmem:[%s2850_s26 + $0xaa] sm:$0xff] }
 0x1ad   : > { %v2604_v56 = vld [vmem:[%s2850_s26 + $0xb1] sm:$0xff] }
 0x1ae   : > { %2048 = vmatmul.f32.gmra.mxu3 %v2601_v7 }
 0x1af   : > { %v1532_v23 = vpop.f32.mrf.mxu2  ;;  %v1758_v55 = vpop.f32.mrf.mxu0 }
 0x1b0   : > { %v1533_v20 = vadd.f32 %v1532_v23, %v1420_v54 }
 0x1b1   : > { %v1422_v34 = vpop.f32.mrf.mxu1  ;;  %v1645_v10 = vpop.f32.mrf.mxu3 }
 0x1b2   : > { %v1646_v25 = vadd.f32 %v1645_v10, %v1533_v20  ;;  %2161 = vmatmul.f32.gmra.mxu0 %v2633_v21  ;;  %v1423_v46 = vadd.f32 %v1422_v34, %v3280_v1  ;;  %v2573_v10 = vld [vmem:[%s2850_s26 + $0xc0] sm:$0xff] }
 0x1b4   : > { %v3610_v15 = vadd.f32 %v1758_v55, %v1646_v25  ;;  %1825 = vmatmul.f32.gmra.mxu1 %v2632_v18  ;;  %1938 = vmatmul.f32.gmra.mxu2 %v2570_v52  ;;  %v2636_v55 = vld [vmem:[%s2850_s26 + $0xb2] sm:$0xff]  ;;  %v2605_v25 = vld [vmem:[%s2850_s26 + $0xc1] sm:$0xff] }
 0x1b6   : > { %2051 = vmatmul.f32.gmra.mxu3 %v2602_v26 }
 0x1b7   : > { %v1535_v32 = vpop.f32.mrf.mxu2  ;;  %v1761_v4 = vpop.f32.mrf.mxu0 }
 0x1b8   : > { %v1536_v29 = vadd.f32 %v1535_v32, %v1423_v46 }
 0x1b9   : > { %v1425_v59 = vpop.f32.mrf.mxu1  ;;  %v1648_v33 = vpop.f32.mrf.mxu3 }
 0x1ba   : > { %v1649_v0 = vadd.f32 %v1648_v33, %v1536_v29  ;;  %2164 = vmatmul.f32.gmra.mxu0 %v2634_v48  ;;  %v1426_v1 = vadd.f32 %v1425_v59, %v3300_v14  ;;  %v2574_v33 = vld [vmem:[%s2850_s26 + $0xc8] sm:$0xff] }
 0x1bc   : > { %v3616_v35 = vadd.f32 %v1761_v4, %v1649_v0  ;;  %1828 = vmatmul.f32.gmra.mxu1 %v2633_v21  ;;  %1941 = vmatmul.f32.gmra.mxu2 %v2571_v57  ;;  %v2637_v4 = vld [vmem:[%s2850_s26 + $0xc2] sm:$0xff] }
 0x1bd   : > { %v2606_v0 = vld [vmem:[%s2850_s26 + $0xc9] sm:$0xff] }
 0x1be   : > { %2054 = vmatmul.f32.gmra.mxu3 %v2603_v43 }
 0x1bf   : > { %v1538_v40 = vpop.f32.mrf.mxu2  ;;  %v1764_v11 = vpop.f32.mrf.mxu0 }
 0x1c0   : > { %v1539_v18 = vadd.f32 %v1538_v40, %v1426_v1 }
 0x1c1   : > { %v1428_v17 = vpop.f32.mrf.mxu1  ;;  %v1651_v3 = vpop.f32.mrf.mxu3 }
 0x1c2   : > { %v1652_v42 = vadd.f32 %v1651_v3, %v1539_v18  ;;  %2167 = vmatmul.f32.gmra.mxu0 %v2635_v44  ;;  %v1429_v14 = vadd.f32 %v1428_v17, %v3314_v19  ;;  %v2575_v3 = vld [vmem:[%s2850_s26 + $0xd8] sm:$0xff] }
 0x1c4   : > { %v3622_v7 = vadd.f32 %v1764_v11, %v1652_v42  ;;  %1831 = vmatmul.f32.gmra.mxu1 %v2634_v48  ;;  %1944 = vmatmul.f32.gmra.mxu2 %v2572_v63  ;;  %v2638_v11 = vld [vmem:[%s2850_s26 + $0xca] sm:$0xff]  ;;  %v2607_v42 = vld [vmem:[%s2850_s26 + $0xd9] sm:$0xff] }
 0x1c6   : > { %2057 = vmatmul.f32.gmra.mxu3 %v2604_v56 }
 0x1c7   : > { %v1541_v54 = vpop.f32.mrf.mxu2  ;;  %v1767_v23 = vpop.f32.mrf.mxu0 }
 0x1c8   : > { %v1542_v21 = vadd.f32 %v1541_v54, %v1429_v14 }
 0x1c9   : > { %v1431_v20 = vpop.f32.mrf.mxu1  ;;  %v1654_v34 = vpop.f32.mrf.mxu3 }
 0x1ca   : > { %v1655_v52 = vadd.f32 %v1654_v34, %v1542_v21  ;;  %2170 = vmatmul.f32.gmra.mxu0 %v2636_v55  ;;  %v1432_v19 = vadd.f32 %v1431_v20, %v3334_v28  ;;  %v2576_v34 = vld [vmem:[%s2850_s26 + $0xe0] sm:$0xff] }
 0x1cc   : > { %v3628_v26 = vadd.f32 %v1767_v23, %v1655_v52  ;;  %1834 = vmatmul.f32.gmra.mxu1 %v2635_v44  ;;  %1947 = vmatmul.f32.gmra.mxu2 %v2573_v10  ;;  %v2639_v23 = vld [vmem:[%s2850_s26 + $0xda] sm:$0xff] }
 0x1cd   : > { %v2608_v52 = vld [vmem:[%s2850_s26 + $0xe1] sm:$0xff] }
 0x1ce   : > { %2060 = vmatmul.f32.gmra.mxu3 %v2605_v25 }
 0x1cf   : > { %v1544_v46 = vpop.f32.mrf.mxu2  ;;  %v1770_v32 = vpop.f32.mrf.mxu0 }
 0x1d0   : > { %v1545_v48 = vadd.f32 %v1544_v46, %v1432_v19 }
 0x1d1   : > { %v1434_v29 = vpop.f32.mrf.mxu1  ;;  %v1657_v59 = vpop.f32.mrf.mxu3 }
 0x1d2   : > { %v1658_v57 = vadd.f32 %v1657_v59, %v1545_v48  ;;  %2173 = vmatmul.f32.gmra.mxu0 %v2637_v4  ;;  %v1435_v28 = vadd.f32 %v1434_v29, %v3348_v38  ;;  %v2577_v59 = vld [vmem:[%s2850_s26 + $0xf0] sm:$0xff] }
 0x1d4   : > { %v3634_v43 = vadd.f32 %v1770_v32, %v1658_v57  ;;  %1837 = vmatmul.f32.gmra.mxu1 %v2636_v55  ;;  %1950 = vmatmul.f32.gmra.mxu2 %v2574_v33  ;;  %v2640_v32 = vld [vmem:[%s2850_s26 + $0xe2] sm:$0xff] }
 0x1d6   : > { %2063 = vmatmul.f32.gmra.mxu3 %v2606_v0 }
 0x1d7   : > { %v1547_v1 = vpop.f32.mrf.mxu2  ;;  %v1773_v40 = vpop.f32.mrf.mxu0 }
 0x1d8   : > { %v1548_v44 = vadd.f32 %v1547_v1, %v1435_v28  ;;  %v2234_v1 = vld [vmem:[%s3852_s2] sm:$0x3] }
 0x1d9   : > { %v1437_v18 = vpop.f32.mrf.mxu1  ;;  %v1660_v17 = vpop.f32.mrf.mxu3 }
 0x1da   : > { %v1661_v63 = vadd.f32 %v1660_v17, %v1548_v44  ;;  %2176 = vmatmul.f32.gmra.mxu0 %v2638_v11  ;;  %v1438_v38 = vadd.f32 %v1437_v18, %v3368_v51  ;;  %v2578_v17 = vld [vmem:[%s2850_s26 + $0xf8] sm:$0xff] }
 0x1dc   : > { %v3640_v56 = vadd.f32 %v1773_v40, %v1661_v63  ;;  %1840 = vmatmul.f32.gmra.mxu1 %v2637_v4  ;;  %1953 = vmatmul.f32.gmra.mxu2 %v2575_v3  ;;  %v2641_v40 = vld [vmem:[%s2850_s26 + $0xf2] sm:$0xff]  ;;  %v3660_v63 = vperm.slane %v2234_v1, 0 }
 0x1de   : > { %2066 = vmatmul.f32.gmra.mxu3 %v2607_v42 }
 0x1df   : > { %v1550_v14 = vpop.f32.mrf.mxu2  ;;  %v1776_v54 = vpop.f32.mrf.mxu0 }
 0x1e0   : > { %v1551_v55 = vadd.f32 %v1550_v14, %v1438_v38 }
 0x1e1   : > { %v1440_v21 = vpop.f32.mrf.mxu1  ;;  %v1663_v20 = vpop.f32.mrf.mxu3 }
 0x1e2   : > { %v1664_v10 = vadd.f32 %v1663_v20, %v1551_v55  ;;  %2179 = vmatmul.f32.gmra.mxu0 %v2639_v23  ;;  %v1441_v19 = vadd.f32 %v1440_v21, %v3380_v62  ;;  %v2642_v55 = vld [vmem:[%s2850_s26 + $0xfa] sm:$0xff] }
 0x1e4   : > { %v3646_v25 = vadd.f32 %v1776_v54, %v1664_v10  ;;  %1843 = vmatmul.f32.gmra.mxu1 %v2638_v11  ;;  %1956 = vmatmul.f32.gmra.mxu2 %v2576_v34  ;;  %v2579_v10 = vld [vmem:[%s2850_s26 + $0x108] sm:$0xff] }
 0x1e6   : > { %2069 = vmatmul.f32.gmra.mxu3 %v2608_v52 }
 0x1e7   : > { %v1553_v51 = vpop.f32.mrf.mxu2  ;;  %v1779_v46 = vpop.f32.mrf.mxu0 }
 0x1e8   : > { %v1554_v4 = vadd.f32 %v1553_v51, %v1441_v19  ;;  %v2611_v51 = vld [vmem:[%s2850_s26 + $0x109] sm:$0xff] }
 0x1e9   : > { %v1666_v48 = vpop.f32.mrf.mxu3  ;;  %v1799_v29 = vpop.f32.mrf.mxu1 }
 0x1ea   : > { %v1667_v33 = vadd.f32 %v1666_v48, %v1554_v4  ;;  %2182 = vmatmul.f32.gmra.mxu0 %v2640_v32  ;;  %v1800_v0 = vadd.f32 %v1799_v29, %v3396_v45  ;;  %v2610_v45 = vld [vmem:[%s2850_s26 + $0xf9] sm:$0xff] }
 0x1ec   : > { %v3651_v57 = vadd.f32 %v1779_v46, %v1667_v33  ;;  %1846 = vmatmul.f32.gmra.mxu1 %v2639_v23  ;;  %1959 = vmatmul.f32.gmra.mxu2 %v2577_v59  ;;  %v2643_v59 = vld [vmem:[%s2850_s26 + $0x10a] sm:$0xff] }
 0x1ee   : > { %2072 = vmatmul.f32.gmra.mxu3 %v3416_v58  ;;  %v3663_v58 = vperm.slane %v2234_v1, 1  ;;  %v2580_v1 = vld [vmem:[%s2850_s26 + $0x110] sm:$0xff] }
 0x1ef   : > { %v1912_v62 = vpop.f32.mrf.mxu2  ;;  %v2138_v28 = vpop.f32.mrf.mxu0 }
 0x1f0   : > { %v1913_v11 = vadd.f32 %v1912_v62, %v1800_v0 }
 0x1f1   : > { %v1802_v44 = vpop.f32.mrf.mxu1  ;;  %v2025_v18 = vpop.f32.mrf.mxu3 }
 0x1f2   : > { %v2026_v3 = vadd.f32 %v2025_v18, %v1913_v11  ;;  %2185 = vmatmul.f32.gmra.mxu0 %v2641_v40  ;;  %v1803_v38 = vadd.f32 %v1802_v44, %v3405_v2  ;;  %v2612_v44 = vld [vmem:[%s2850_s26 + $0x111] sm:$0xff] }
 0x1f4   : > { %v2139_v42 = vadd.f32 %v2138_v28, %v2026_v3  ;;  %1849 = vmatmul.f32.gmra.mxu1 %v2640_v32  ;;  %1962 = vmatmul.f32.gmra.mxu2 %v2578_v17 }
 0x1f6   : > { %v2236_v14 = vmul.f32 %v3660_v63, %v2139_v42  ;;  %2075 = vmatmul.f32.gmra.mxu3 %v2610_v45  ;;  %v2644_v42 = vld [vmem:[%s2850_s26 + $0x112] sm:$0xff] }
 0x1f7   : > { %v1915_v54 = vpop.f32.mrf.mxu2  ;;  %v2141_v23 = vpop.f32.mrf.mxu0 }
 0x1f8   : > { %v2269_v21 = vadd.f32 %v3663_v58, %v2236_v14  ;;  %v1916_v20 = vadd.f32 %v1915_v54, %v1803_v38 }
 0x1f9   : > { %v1805_v34 = vpop.f32.mrf.mxu1  ;;  %v2028_v2 = vpop.f32.mrf.mxu3 }
 0x1fa   : > { %v2301_v52 = vmax.f32 %v2269_v21, 0.0  ;;  %v2029_v19 = vadd.f32 %v2028_v2, %v1916_v20  ;;  %2188 = vmatmul.f32.gmra.mxu0 %v2642_v55  ;;  %v1806_v32 = vadd.f32 %v1805_v34, %v3423_v22  ;;  %v2581_v21 = vld [vmem:[%s2850_s26 + $0x120] sm:$0xff] }
 0x1fb   : > { %v2613_v34 = vld [vmem:[%s2850_s26 + $0x121] sm:$0xff] }
 0x1fc   : > { %2333 = vst [vmem:[%s3673_s25] sm:$0xff] %v2301_v52  ;;  %v2142_v46 = vadd.f32 %v2141_v23, %v2029_v19  ;;  %1852 = vmatmul.f32.gmra.mxu1 %v2641_v40  ;;  %1965 = vmatmul.f32.gmra.mxu2 %v2579_v10 }
 0x1fe   : > { %v2237_v4 = vmul.f32 %v3660_v63, %v2142_v46  ;;  %2078 = vmatmul.f32.gmra.mxu3 %v2611_v51  ;;  %v2645_v51 = vld [vmem:[%s2850_s26 + $0x122] sm:$0xff] }
 0x1ff   : > { %v1918_v48 = vpop.f32.mrf.mxu2  ;;  %v2144_v29 = vpop.f32.mrf.mxu0 }
 0x200   : > { %v2270_v33 = vadd.f32 %v3663_v58, %v2237_v4  ;;  %v1919_v0 = vadd.f32 %v1918_v48, %v1806_v32 }
 0x201   : > { %v1808_v62 = vpop.f32.mrf.mxu1  ;;  %v2031_v28 = vpop.f32.mrf.mxu3 }
 0x202   : > { %v2302_v11 = vmax.f32 %v2270_v33, 0.0  ;;  %v2032_v40 = vadd.f32 %v2031_v28, %v1919_v0  ;;  %2191 = vmatmul.f32.gmra.mxu0 %v2643_v59  ;;  %v1809_v18 = vadd.f32 %v1808_v62, %v3432_v16  ;;  %v2614_v0 = vld [vmem:[%s2850_s26 + $0x129] sm:$0xff] }
 0x204   : > { %2334 = vst [vmem:[%s3673_s25 + $0x8] sm:$0xff] %v2302_v11  ;;  %v2145_v22 = vadd.f32 %v2144_v29, %v2032_v40  ;;  %1855 = vmatmul.f32.gmra.mxu1 %v2642_v55  ;;  %1968 = vmatmul.f32.gmra.mxu2 %v2580_v1  ;;  %v2582_v29 = vld [vmem:[%s2850_s26 + $0x128] sm:$0xff] }
 0x205   : > { %v2646_v40 = vld [vmem:[%s2850_s26 + $0x12a] sm:$0xff] }
 0x206   : > { %v2238_v17 = vmul.f32 %v3660_v63, %v2145_v22  ;;  %2081 = vmatmul.f32.gmra.mxu3 %v2612_v44 }
 0x207   : > { %v1921_v3 = vpop.f32.mrf.mxu2  ;;  %v2147_v45 = vpop.f32.mrf.mxu0 }
 0x208   : > { %v2271_v38 = vadd.f32 %v3663_v58, %v2238_v17  ;;  %v1922_v14 = vadd.f32 %v1921_v3, %v1809_v18  ;;  %v2583_v3 = vld [vmem:[%s2850_s26 + $0x138] sm:$0xff] }
 0x209   : > { %v1811_v54 = vpop.f32.mrf.mxu1  ;;  %v2034_v23 = vpop.f32.mrf.mxu3 }
 0x20a   : > { %v2303_v20 = vmax.f32 %v2271_v38, 0.0  ;;  %v2035_v55 = vadd.f32 %v2034_v23, %v1922_v14  ;;  %2194 = vmatmul.f32.gmra.mxu0 %v2644_v42  ;;  %v1812_v2 = vadd.f32 %v1811_v54, %v3448_v24  ;;  %v2615_v38 = vld [vmem:[%s2850_s26 + $0x139] sm:$0xff] }
 0x20c   : > { %2335 = vst [vmem:[%s3673_s25 + $0x10] sm:$0xff] %v2303_v20  ;;  %v2148_v16 = vadd.f32 %v2147_v45, %v2035_v55  ;;  %1858 = vmatmul.f32.gmra.mxu1 %v2643_v59  ;;  %1971 = vmatmul.f32.gmra.mxu2 %v2581_v21  ;;  %v2647_v20 = vld [vmem:[%s2850_s26 + $0x13a] sm:$0xff] }
 0x20e   : > { %v2239_v10 = vmul.f32 %v3660_v63, %v2148_v16  ;;  %2084 = vmatmul.f32.gmra.mxu3 %v2613_v34 }
 0x20f   : > { %v1924_v52 = vpop.f32.mrf.mxu2  ;;  %v2150_v19 = vpop.f32.mrf.mxu0 }
 0x210   : > { %v2272_v46 = vadd.f32 %v3663_v58, %v2239_v10  ;;  %v1925_v32 = vadd.f32 %v1924_v52, %v1812_v2  ;;  %v2584_v10 = vld [vmem:[%s2850_s26 + $0x140] sm:$0xff] }
 0x211   : > { %v1814_v4 = vpop.f32.mrf.mxu1  ;;  %v2037_v48 = vpop.f32.mrf.mxu3 }
 0x212   : > { %v2304_v33 = vmax.f32 %v2272_v46, 0.0  ;;  %v2038_v59 = vadd.f32 %v2037_v48, %v1925_v32  ;;  %2197 = vmatmul.f32.gmra.mxu0 %v2645_v51  ;;  %v1815_v62 = vadd.f32 %v1814_v4, %v3458_v39 }
 0x214   : > { %2336 = vst [vmem:[%s3673_s25 + $0x18] sm:$0xff] %v2304_v33  ;;  %v2151_v24 = vadd.f32 %v2150_v19, %v2038_v59  ;;  %1861 = vmatmul.f32.gmra.mxu1 %v2644_v42  ;;  %1974 = vmatmul.f32.gmra.mxu2 %v2582_v29  ;;  %v2648_v29 = vld [vmem:[%s2850_s26 + $0x142] sm:$0xff] }
 0x216   : > { %v2240_v28 = vmul.f32 %v3660_v63, %v2151_v24  ;;  %2087 = vmatmul.f32.gmra.mxu3 %v2614_v0 }
 0x217   : > { %v1927_v1 = vpop.f32.mrf.mxu2  ;;  %v2153_v11 = vpop.f32.mrf.mxu0 }
 0x218   : > { %v2273_v44 = vadd.f32 %v3663_v58, %v2240_v28  ;;  %v1928_v22 = vadd.f32 %v1927_v1, %v1815_v62  ;;  %v2585_v62 = vld [vmem:[%s2850_s26 + $0x150] sm:$0xff] }
 0x219   : > { %v1817_v18 = vpop.f32.mrf.mxu1  ;;  %v2040_v17 = vpop.f32.mrf.mxu3 }
 0x21a   : > { %v2305_v45 = vmax.f32 %v2273_v44, 0.0  ;;  %v2041_v42 = vadd.f32 %v2040_v17, %v1928_v22  ;;  %2200 = vmatmul.f32.gmra.mxu0 %v2646_v40  ;;  %v1818_v14 = vadd.f32 %v1817_v18, %v3473_v6  ;;  %v2649_v17 = vld [vmem:[%s2850_s26 + $0x152] sm:$0xff] }
 0x21c   : > { %2337 = vst [vmem:[%s3673_s25 + $0x20] sm:$0xff] %v2305_v45  ;;  %v2154_v39 = vadd.f32 %v2153_v11, %v2041_v42  ;;  %1864 = vmatmul.f32.gmra.mxu1 %v2645_v51  ;;  %1977 = vmatmul.f32.gmra.mxu2 %v2583_v3  ;;  %v2616_v51 = vld [vmem:[%s2850_s26 + $0x141] sm:$0xff]  ;;  %v2617_v11 = vld [vmem:[%s2850_s26 + $0x151] sm:$0xff] }
 0x21e   : > { %v2241_v54 = vmul.f32 %v3660_v63, %v2154_v39  ;;  %2090 = vmatmul.f32.gmra.mxu3 %v2615_v38  ;;  %v2586_v39 = vld [vmem:[%s2850_s26 + $0x158] sm:$0xff] }
 0x21f   : > { %v1930_v23 = vpop.f32.mrf.mxu2  ;;  %v2156_v21 = vpop.f32.mrf.mxu0 }
 0x220   : > { %v2274_v55 = vadd.f32 %v3663_v58, %v2241_v54  ;;  %v1931_v34 = vadd.f32 %v1930_v23, %v1818_v14  ;;  %v2618_v23 = vld [vmem:[%s2850_s26 + $0x159] sm:$0xff] }
 0x221   : > { %v1820_v16 = vpop.f32.mrf.mxu1  ;;  %v2043_v2 = vpop.f32.mrf.mxu3 }
 0x222   : > { %v2306_v52 = vmax.f32 %v2274_v55, 0.0  ;;  %v2044_v19 = vadd.f32 %v2043_v2, %v1931_v34  ;;  %2203 = vmatmul.f32.gmra.mxu0 %v2647_v20  ;;  %v1821_v46 = vadd.f32 %v1820_v16, %v3482_v49  ;;  %v2650_v16 = vld [vmem:[%s2850_s26 + $0x15a] sm:$0xff] }
 0x224   : > { %2338 = vst [vmem:[%s3673_s25 + $0x28] sm:$0xff] %v2306_v52  ;;  %v2157_v6 = vadd.f32 %v2156_v21, %v2044_v19  ;;  %1867 = vmatmul.f32.gmra.mxu1 %v2646_v40  ;;  %1980 = vmatmul.f32.gmra.mxu2 %v2584_v10 }
 0x226   : > { %v2242_v32 = vmul.f32 %v3660_v63, %v2157_v6  ;;  %2093 = vmatmul.f32.gmra.mxu3 %v2616_v51  ;;  %v2587_v51 = vld [vmem:[%s2850_s26 + $0x168] sm:$0xff] }
 0x227   : > { %v1933_v4 = vpop.f32.mrf.mxu2  ;;  %v2159_v48 = vpop.f32.mrf.mxu0 }
 0x228   : > { %v2275_v33 = vadd.f32 %v3663_v58, %v2242_v32  ;;  %v1934_v59 = vadd.f32 %v1933_v4, %v1821_v46  ;;  %v2619_v32 = vld [vmem:[%s2850_s26 + $0x169] sm:$0xff] }
 0x229   : > { %v1823_v0 = vpop.f32.mrf.mxu1  ;;  %v2046_v24 = vpop.f32.mrf.mxu3 }
 0x22a   : > { %v2307_v28 = vmax.f32 %v2275_v33, 0.0  ;;  %v2047_v1 = vadd.f32 %v2046_v24, %v1934_v59  ;;  %2206 = vmatmul.f32.gmra.mxu0 %v2648_v29  ;;  %v1824_v40 = vadd.f32 %v1823_v0, %v3497_v53  ;;  %v2651_v59 = vld [vmem:[%s2850_s26 + $0x16a] sm:$0xff] }
 0x22c   : > { %2339 = vst [vmem:[%s3673_s25 + $0x30] sm:$0xff] %v2307_v28  ;;  %v2160_v49 = vadd.f32 %v2159_v48, %v2047_v1  ;;  %1870 = vmatmul.f32.gmra.mxu1 %v2647_v20  ;;  %1983 = vmatmul.f32.gmra.mxu2 %v2585_v62  ;;  %v2588_v1 = vld [vmem:[%s2850_s26 + $0x170] sm:$0xff] }
 0x22e   : > { %v2243_v44 = vmul.f32 %v3660_v63, %v2160_v49  ;;  %2096 = vmatmul.f32.gmra.mxu3 %v2617_v11 }
 0x22f   : > { %v1936_v22 = vpop.f32.mrf.mxu2  ;;  %v2162_v18 = vpop.f32.mrf.mxu0 }
 0x230   : > { %v2276_v3 = vadd.f32 %v3663_v58, %v2243_v44  ;;  %v1937_v45 = vadd.f32 %v1936_v22, %v1824_v40  ;;  %v2620_v40 = vld [vmem:[%s2850_s26 + $0x171] sm:$0xff] }
 0x231   : > { %v1826_v42 = vpop.f32.mrf.mxu1  ;;  %v2049_v38 = vpop.f32.mrf.mxu3 }
 0x232   : > { %v2308_v14 = vmax.f32 %v2276_v3, 0.0  ;;  %v2050_v54 = vadd.f32 %v2049_v38, %v1937_v45  ;;  %2209 = vmatmul.f32.gmra.mxu0 %v2649_v17  ;;  %v1827_v21 = vadd.f32 %v1826_v42, %v3506_v5  ;;  %v2652_v3 = vld [vmem:[%s2850_s26 + $0x172] sm:$0xff] }
 0x234   : > { %2340 = vst [vmem:[%s3673_s25 + $0x38] sm:$0xff] %v2308_v14  ;;  %v2163_v53 = vadd.f32 %v2162_v18, %v2050_v54  ;;  %1873 = vmatmul.f32.gmra.mxu1 %v2648_v29  ;;  %1986 = vmatmul.f32.gmra.mxu2 %v2586_v39  ;;  %v2589_v14 = vld [vmem:[%s2850_s26 + $0x180] sm:$0xff] }
 0x236   : > { %v2244_v20 = vmul.f32 %v3660_v63, %v2163_v53  ;;  %2099 = vmatmul.f32.gmra.mxu3 %v2618_v23  ;;  %v2621_v53 = vld [vmem:[%s2850_s26 + $0x181] sm:$0xff] }
 0x237   : > { %v1939_v55 = vpop.f32.mrf.mxu2  ;;  %v2165_v34 = vpop.f32.mrf.mxu0 }
 0x238   : > { %v2277_v2 = vadd.f32 %v3663_v58, %v2244_v20  ;;  %v1940_v10 = vadd.f32 %v1939_v55, %v1827_v21 }
 0x239   : > { %v1829_v52 = vpop.f32.mrf.mxu1  ;;  %v2052_v19 = vpop.f32.mrf.mxu3 }
 0x23a   : > { %v2309_v6 = vmax.f32 %v2277_v2, 0.0  ;;  %v2053_v46 = vadd.f32 %v2052_v19, %v1940_v10  ;;  %2212 = vmatmul.f32.gmra.mxu0 %v2650_v16  ;;  %v1830_v4 = vadd.f32 %v1829_v52, %v3521_v30 }
 0x23c   : > { %2341 = vst [vmem:[%s3673_s25 + $0x40] sm:$0xff] %v2309_v6  ;;  %v2166_v5 = vadd.f32 %v2165_v34, %v2053_v46  ;;  %1876 = vmatmul.f32.gmra.mxu1 %v2649_v17  ;;  %1989 = vmatmul.f32.gmra.mxu2 %v2587_v51  ;;  %v2590_v51 = vld [vmem:[%s2850_s26 + $0x188] sm:$0xff] }
 0x23e   : > { %v2245_v48 = vmul.f32 %v3660_v63, %v2166_v5  ;;  %2102 = vmatmul.f32.gmra.mxu3 %v2619_v32  ;;  %v2622_v32 = vld [vmem:[%s2850_s26 + $0x189] sm:$0xff] }
 0x23f   : > { %v1942_v29 = vpop.f32.mrf.mxu2  ;;  %v2168_v33 = vpop.f32.mrf.mxu0 }
 0x240   : > { %v2278_v0 = vadd.f32 %v3663_v58, %v2245_v48  ;;  %v1943_v24 = vadd.f32 %v1942_v29, %v1830_v4 }
 0x241   : > { %v1832_v62 = vpop.f32.mrf.mxu1  ;;  %v2055_v28 = vpop.f32.mrf.mxu3 }
 0x242   : > { %v2310_v11 = vmax.f32 %v2278_v0, 0.0  ;;  %v2056_v49 = vadd.f32 %v2055_v28, %v1943_v24  ;;  %2215 = vmatmul.f32.gmra.mxu0 %v2651_v59  ;;  %v1833_v44 = vadd.f32 %v1832_v62, %v3530_v50  ;;  %v2591_v28 = vld [vmem:[%s2850_s26 + $0x198] sm:$0xff] }
 0x244   : > { %2342 = vst [vmem:[%s3673_s25 + $0x48] sm:$0xff] %v2310_v11  ;;  %v2169_v30 = vadd.f32 %v2168_v33, %v2056_v49  ;;  %1879 = vmatmul.f32.gmra.mxu1 %v2650_v16  ;;  %1992 = vmatmul.f32.gmra.mxu2 %v2588_v1  ;;  %v2653_v16 = vld [vmem:[%s2850_s26 + $0x182] sm:$0xff]  ;;  %v2654_v33 = vld [vmem:[%s2850_s26 + $0x18a] sm:$0xff]  ;;  %v2623_v49 = vld [vmem:[%s2850_s26 + $0x199] sm:$0xff] }
 0x246   : > { %v2246_v22 = vmul.f32 %v3660_v63, %v2169_v30  ;;  %2105 = vmatmul.f32.gmra.mxu3 %v2620_v40 }
 0x247   : > { %v1945_v18 = vpop.f32.mrf.mxu2  ;;  %v2171_v17 = vpop.f32.mrf.mxu0 }
 0x248   : > { %v2279_v45 = vadd.f32 %v3663_v58, %v2246_v22  ;;  %v1946_v42 = vadd.f32 %v1945_v18, %v1833_v44  ;;  %v2655_v18 = vld [vmem:[%s2850_s26 + $0x19a] sm:$0xff] }
 0x249   : > { %v1835_v38 = vpop.f32.mrf.mxu1  ;;  %v2058_v39 = vpop.f32.mrf.mxu3 }
 0x24a   : > { %v2311_v54 = vmax.f32 %v2279_v45, 0.0  ;;  %v2059_v23 = vadd.f32 %v2058_v39, %v1946_v42  ;;  %2218 = vmatmul.f32.gmra.mxu0 %v2652_v3  ;;  %v1836_v21 = vadd.f32 %v1835_v38, %v3535_v36  ;;  %v2592_v38 = vld [vmem:[%s2850_s26 + $0x1a0] sm:$0xff] }
 0x24c   : > { %2343 = vst [vmem:[%s3673_s25 + $0x50] sm:$0xff] %v2311_v54  ;;  %v2172_v50 = vadd.f32 %v2171_v17, %v2059_v23  ;;  %1882 = vmatmul.f32.gmra.mxu1 %v2651_v59  ;;  %1995 = vmatmul.f32.gmra.mxu2 %v2589_v14  ;;  %v2624_v54 = vld [vmem:[%s2850_s26 + $0x1a1] sm:$0xff] }
 0x24e   : > { %v2247_v20 = vmul.f32 %v3660_v63, %v2172_v50  ;;  %2108 = vmatmul.f32.gmra.mxu3 %v2621_v53 }
 0x24f   : > { %v1948_v55 = vpop.f32.mrf.mxu2  ;;  %v2174_v34 = vpop.f32.mrf.mxu0 }
 0x250   : > { %v2280_v2 = vadd.f32 %v3663_v58, %v2247_v20  ;;  %v1949_v10 = vadd.f32 %v1948_v55, %v1836_v21  ;;  %v2656_v20 = vld [vmem:[%s2850_s26 + $0x1a2] sm:$0xff] }
 0x251   : > { %v1838_v52 = vpop.f32.mrf.mxu1  ;;  %v2061_v19 = vpop.f32.mrf.mxu3 }
 0x252   : > { %v2312_v6 = vmax.f32 %v2280_v2, 0.0  ;;  %v2062_v46 = vadd.f32 %v2061_v19, %v1949_v10  ;;  %2221 = vmatmul.f32.gmra.mxu0 %v2653_v16  ;;  %v1839_v5 = vadd.f32 %v1838_v52, %v3542_v41 }
 0x254   : > { %2344 = vst [vmem:[%s3673_s25 + $0x58] sm:$0xff] %v2312_v6  ;;  %v2175_v36 = vadd.f32 %v2174_v34, %v2062_v46  ;;  %1885 = vmatmul.f32.gmra.mxu1 %v2652_v3  ;;  %1998 = vmatmul.f32.gmra.mxu2 %v2590_v51 }
 0x256   : > { %v2248_v4 = vmul.f32 %v3660_v63, %v2175_v36  ;;  %2111 = vmatmul.f32.gmra.mxu3 %v2622_v32 }
 0x257   : > { %v1951_v48 = vpop.f32.mrf.mxu2  ;;  %v2177_v29 = vpop.f32.mrf.mxu0 }
 0x258   : > { %v2281_v59 = vadd.f32 %v3663_v58, %v2248_v4  ;;  %v1952_v0 = vadd.f32 %v1951_v48, %v1839_v5 }
 0x259   : > { %v1841_v24 = vpop.f32.mrf.mxu1  ;;  %v2064_v62 = vpop.f32.mrf.mxu3 }
 0x25a   : > { %v2313_v1 = vmax.f32 %v2281_v59, 0.0  ;;  %v2065_v11 = vadd.f32 %v2064_v62, %v1952_v0  ;;  %2224 = vmatmul.f32.gmra.mxu0 %v2654_v33  ;;  %v1842_v40 = vadd.f32 %v1841_v24, %v3548_v8 }
 0x25c   : > { %2345 = vst [vmem:[%s3673_s25 + $0x60] sm:$0xff] %v2313_v1  ;;  %v2178_v41 = vadd.f32 %v2177_v29, %v2065_v11  ;;  %1888 = vmatmul.f32.gmra.mxu1 %v2653_v16  ;;  %2001 = vmatmul.f32.gmra.mxu2 %v2591_v28 }
 0x25e   : > { %v2249_v30 = vmul.f32 %v3660_v63, %v2178_v41  ;;  %2114 = vmatmul.f32.gmra.mxu3 %v2623_v49 }
 0x25f   : > { %v1954_v44 = vpop.f32.mrf.mxu2  ;;  %v2180_v22 = vpop.f32.mrf.mxu0 }
 0x260   : > { %v2282_v17 = vadd.f32 %v3663_v58, %v2249_v30  ;;  %v1955_v3 = vadd.f32 %v1954_v44, %v1842_v40 }
 0x261   : > { %v1844_v45 = vpop.f32.mrf.mxu1  ;;  %v2067_v42 = vpop.f32.mrf.mxu3 }
 0x262   : > { %v2314_v39 = vmax.f32 %v2282_v17, 0.0  ;;  %v2068_v14 = vadd.f32 %v2067_v42, %v1955_v3  ;;  %2227 = vmatmul.f32.gmra.mxu0 %v2655_v18  ;;  %v1845_v8 = vadd.f32 %v1844_v45, %v3554_v13 }
 0x264   : > { %2346 = vst [vmem:[%s3673_s25 + $0x68] sm:$0xff] %v2314_v39  ;;  %v2181_v23 = vadd.f32 %v2180_v22, %v2068_v14  ;;  %1891 = vmatmul.f32.gmra.mxu1 %v2654_v33  ;;  %2004 = vmatmul.f32.gmra.mxu2 %v2592_v38 }
 0x266   : > { %v2250_v53 = vmul.f32 %v3660_v63, %v2181_v23  ;;  %2117 = vmatmul.f32.gmra.mxu3 %v2624_v54 }
 0x267   : > { %v1957_v50 = vpop.f32.mrf.mxu2  ;;  %v2183_v21 = vpop.f32.mrf.mxu0 }
 0x268   : > { %v2283_v55 = vadd.f32 %v3663_v58, %v2250_v53  ;;  %v1958_v34 = vadd.f32 %v1957_v50, %v1845_v8 }
 0x269   : > { %v1847_v16 = vpop.f32.mrf.mxu1  ;;  %v2070_v2 = vpop.f32.mrf.mxu3 }
 0x26a   : > { %v2315_v10 = vmax.f32 %v2283_v55, 0.0  ;;  %v2071_v52 = vadd.f32 %v2070_v2, %v1958_v34  ;;  %2230 = vmatmul.f32.gmra.mxu0 %v2656_v20  ;;  %v1848_v51 = vadd.f32 %v1847_v16, %v3561_v60 }
 0x26c   : > { %2347 = vst [vmem:[%s3673_s25 + $0x70] sm:$0xff] %v2315_v10  ;;  %v2184_v19 = vadd.f32 %v2183_v21, %v2071_v52 }
 0x26e   : > { %v2251_v13 = vmul.f32 %v3660_v63, %v2184_v19 }
 0x26f   : > { %v1960_v6 = vpop.f32.mrf.mxu2  ;;  %v2186_v46 = vpop.f32.mrf.mxu0 }
 0x270   : > { %v2284_v32 = vadd.f32 %v3663_v58, %v2251_v13  ;;  %v1961_v36 = vadd.f32 %v1960_v6, %v1848_v51 }
 0x271   : > { %v1850_v5 = vpop.f32.mrf.mxu1  ;;  %v2073_v4 = vpop.f32.mrf.mxu3 }
 0x272   : > { %v2316_v48 = vmax.f32 %v2284_v32, 0.0  ;;  %v2074_v29 = vadd.f32 %v2073_v4, %v1961_v36  ;;  %v1851_v59 = vadd.f32 %v1850_v5, %v3568_v37 }
 0x274   : > { %2348 = vst [vmem:[%s3673_s25 + $0x78] sm:$0xff] %v2316_v48  ;;  %v2187_v33 = vadd.f32 %v2186_v46, %v2074_v29 }
 0x276   : > { %v2252_v0 = vmul.f32 %v3660_v63, %v2187_v33 }
 0x277   : > { %v1963_v24 = vpop.f32.mrf.mxu2  ;;  %v2189_v60 = vpop.f32.mrf.mxu0 }
 0x278   : > { %v2285_v62 = vadd.f32 %v3663_v58, %v2252_v0  ;;  %v1964_v28 = vadd.f32 %v1963_v24, %v1851_v59 }
 0x279   : > { %v1853_v1 = vpop.f32.mrf.mxu1  ;;  %v2076_v11 = vpop.f32.mrf.mxu3 }
 0x27a   : > { %v2317_v49 = vmax.f32 %v2285_v62, 0.0  ;;  %v2077_v41 = vadd.f32 %v2076_v11, %v1964_v28  ;;  %v1854_v30 = vadd.f32 %v1853_v1, %v3574_v47 }
 0x27c   : > { %2349 = vst [vmem:[%s3673_s25 + $0x80] sm:$0xff] %v2317_v49  ;;  %v2190_v40 = vadd.f32 %v2189_v60, %v2077_v41 }
 0x27e   : > { %v2253_v44 = vmul.f32 %v3660_v63, %v2190_v40 }
 0x27f   : > { %v1966_v22 = vpop.f32.mrf.mxu2  ;;  %v2192_v37 = vpop.f32.mrf.mxu0 }
 0x280   : > { %v2286_v18 = vadd.f32 %v3663_v58, %v2253_v44  ;;  %v1967_v17 = vadd.f32 %v1966_v22, %v1854_v30 }
 0x281   : > { %v1856_v3 = vpop.f32.mrf.mxu1  ;;  %v2079_v45 = vpop.f32.mrf.mxu3 }
 0x282   : > { %v2318_v42 = vmax.f32 %v2286_v18, 0.0  ;;  %v2080_v38 = vadd.f32 %v2079_v45, %v1967_v17  ;;  %v1857_v14 = vadd.f32 %v1856_v3, %v3580_v27 }
 0x284   : > { %2350 = vst [vmem:[%s3673_s25 + $0x88] sm:$0xff] %v2318_v42  ;;  %v2193_v39 = vadd.f32 %v2192_v37, %v2080_v38 }
 0x286   : > { %v2254_v54 = vmul.f32 %v3660_v63, %v2193_v39 }
 0x287   : > { %v1969_v23 = vpop.f32.mrf.mxu2  ;;  %v2195_v47 = vpop.f32.mrf.mxu0 }
 0x288   : > { %v2287_v8 = vadd.f32 %v3663_v58, %v2254_v54  ;;  %v1970_v53 = vadd.f32 %v1969_v23, %v1857_v14 }
 0x289   : > { %v1859_v50 = vpop.f32.mrf.mxu1  ;;  %v2082_v21 = vpop.f32.mrf.mxu3 }
 0x28a   : > { %v2319_v20 = vmax.f32 %v2287_v8, 0.0  ;;  %v2083_v55 = vadd.f32 %v2082_v21, %v1970_v53  ;;  %v1860_v16 = vadd.f32 %v1859_v50, %v3586_v31 }
 0x28c   : > { %2351 = vst [vmem:[%s3673_s25 + $0x90] sm:$0xff] %v2319_v20  ;;  %v2196_v34 = vadd.f32 %v2195_v47, %v2083_v55 }
 0x28e   : > { %v2255_v2 = vmul.f32 %v3660_v63, %v2196_v34 }
 0x28f   : > { %v1972_v10 = vpop.f32.mrf.mxu2  ;;  %v2198_v27 = vpop.f32.mrf.mxu0 }
 0x290   : > { %v2288_v52 = vadd.f32 %v3663_v58, %v2255_v2  ;;  %v1973_v19 = vadd.f32 %v1972_v10, %v1860_v16 }
 0x291   : > { %v1862_v51 = vpop.f32.mrf.mxu1  ;;  %v2085_v13 = vpop.f32.mrf.mxu3 }
 0x292   : > { %v2320_v6 = vmax.f32 %v2288_v52, 0.0  ;;  %v2086_v46 = vadd.f32 %v2085_v13, %v1973_v19  ;;  %v1863_v36 = vadd.f32 %v1862_v51, %v3592_v61 }
 0x294   : > { %2352 = vst [vmem:[%s3673_s25 + $0x98] sm:$0xff] %v2320_v6  ;;  %v2199_v32 = vadd.f32 %v2198_v27, %v2086_v46 }
 0x296   : > { %v2256_v5 = vmul.f32 %v3660_v63, %v2199_v32 }
 0x297   : > { %v1975_v4 = vpop.f32.mrf.mxu2  ;;  %v2201_v31 = vpop.f32.mrf.mxu0 }
 0x298   : > { %v2289_v48 = vadd.f32 %v3663_v58, %v2256_v5  ;;  %v1976_v29 = vadd.f32 %v1975_v4, %v1863_v36 }
 0x299   : > { %v1865_v33 = vpop.f32.mrf.mxu1  ;;  %v2088_v59 = vpop.f32.mrf.mxu3 }
 0x29a   : > { %v2321_v0 = vmax.f32 %v2289_v48, 0.0  ;;  %v2089_v24 = vadd.f32 %v2088_v59, %v1976_v29  ;;  %v1866_v62 = vadd.f32 %v1865_v33, %v3598_v12 }
 0x29c   : > { %2353 = vst [vmem:[%s3673_s25 + $0xa0] sm:$0xff] %v2321_v0  ;;  %v2202_v60 = vadd.f32 %v2201_v31, %v2089_v24 }
 0x29e   : > { %v2257_v28 = vmul.f32 %v3660_v63, %v2202_v60 }
 0x29f   : > { %v1978_v1 = vpop.f32.mrf.mxu2  ;;  %v2204_v61 = vpop.f32.mrf.mxu0 }
 0x2a0   : > { %v2290_v11 = vadd.f32 %v3663_v58, %v2257_v28  ;;  %v1979_v49 = vadd.f32 %v1978_v1, %v1866_v62 }
 0x2a1   : > { %v1868_v41 = vpop.f32.mrf.mxu1  ;;  %v2091_v40 = vpop.f32.mrf.mxu3 }
 0x2a2   : > { %v2322_v30 = vmax.f32 %v2290_v11, 0.0  ;;  %v2092_v44 = vadd.f32 %v2091_v40, %v1979_v49  ;;  %v1869_v37 = vadd.f32 %v1868_v41, %v3604_v9 }
 0x2a4   : > { %2354 = vst [vmem:[%s3673_s25 + $0xa8] sm:$0xff] %v2322_v30  ;;  %v2205_v22 = vadd.f32 %v2204_v61, %v2092_v44 }
 0x2a6   : > { %v2258_v18 = vmul.f32 %v3660_v63, %v2205_v22 }
 0x2a7   : > { %v1981_v17 = vpop.f32.mrf.mxu2  ;;  %v2207_v12 = vpop.f32.mrf.mxu0 }
 0x2a8   : > { %v2291_v3 = vadd.f32 %v3663_v58, %v2258_v18  ;;  %v1982_v45 = vadd.f32 %v1981_v17, %v1869_v37 }
 0x2a9   : > { %v1871_v42 = vpop.f32.mrf.mxu1  ;;  %v2094_v38 = vpop.f32.mrf.mxu3 }
 0x2aa   : > { %v2323_v39 = vmax.f32 %v2291_v3, 0.0  ;;  %v2095_v14 = vadd.f32 %v2094_v38, %v1982_v45  ;;  %v1872_v23 = vadd.f32 %v1871_v42, %v3610_v15 }
 0x2ac   : > { %2355 = vst [vmem:[%s3673_s25 + $0xb0] sm:$0xff] %v2323_v39  ;;  %v2208_v54 = vadd.f32 %v2207_v12, %v2095_v14 }
 0x2ae   : > { %v2259_v47 = vmul.f32 %v3660_v63, %v2208_v54 }
 0x2af   : > { %v1984_v8 = vpop.f32.mrf.mxu2  ;;  %v2210_v9 = vpop.f32.mrf.mxu0 }
 0x2b0   : > { %v2292_v53 = vadd.f32 %v3663_v58, %v2259_v47  ;;  %v1985_v50 = vadd.f32 %v1984_v8, %v1872_v23 }
 0x2b1   : > { %v1874_v21 = vpop.f32.mrf.mxu1  ;;  %v2097_v20 = vpop.f32.mrf.mxu3 }
 0x2b2   : > { %v2324_v55 = vmax.f32 %v2292_v53, 0.0  ;;  %v2098_v34 = vadd.f32 %v2097_v20, %v1985_v50  ;;  %v1875_v2 = vadd.f32 %v1874_v21, %v3616_v35 }
 0x2b4   : > { %2356 = vst [vmem:[%s3673_s25 + $0xb8] sm:$0xff] %v2324_v55  ;;  %v2211_v16 = vadd.f32 %v2210_v9, %v2098_v34 }
 0x2b6   : > { %v2260_v10 = vmul.f32 %v3660_v63, %v2211_v16 }
 0x2b7   : > { %v1987_v27 = vpop.f32.mrf.mxu2  ;;  %v2213_v15 = vpop.f32.mrf.mxu0 }
 0x2b8   : > { %v2293_v52 = vadd.f32 %v3663_v58, %v2260_v10  ;;  %v1988_v19 = vadd.f32 %v1987_v27, %v1875_v2 }
 0x2b9   : > { %v1877_v51 = vpop.f32.mrf.mxu1  ;;  %v2100_v13 = vpop.f32.mrf.mxu3 }
 0x2ba   : > { %v2325_v6 = vmax.f32 %v2293_v52, 0.0  ;;  %v2101_v46 = vadd.f32 %v2100_v13, %v1988_v19  ;;  %v1878_v36 = vadd.f32 %v1877_v51, %v3622_v7 }
 0x2bc   : > { %2357 = vst [vmem:[%s3673_s25 + $0xc0] sm:$0xff] %v2325_v6  ;;  %v2214_v32 = vadd.f32 %v2213_v15, %v2101_v46 }
 0x2be   : > { %v2261_v5 = vmul.f32 %v3660_v63, %v2214_v32 }
 0x2bf   : > { %v1990_v4 = vpop.f32.mrf.mxu2  ;;  %v2216_v35 = vpop.f32.mrf.mxu0 }
 0x2c0   : > { %v2294_v31 = vadd.f32 %v3663_v58, %v2261_v5  ;;  %v1991_v48 = vadd.f32 %v1990_v4, %v1878_v36 }
 0x2c1   : > { %v1880_v29 = vpop.f32.mrf.mxu1  ;;  %v2103_v33 = vpop.f32.mrf.mxu3 }
 0x2c2   : > { %v2326_v59 = vmax.f32 %v2294_v31, 0.0  ;;  %v2104_v0 = vadd.f32 %v2103_v33, %v1991_v48  ;;  %v1881_v60 = vadd.f32 %v1880_v29, %v3628_v26 }
 0x2c4   : > { %2358 = vst [vmem:[%s3673_s25 + $0xc8] sm:$0xff] %v2326_v59  ;;  %v2217_v24 = vadd.f32 %v2216_v35, %v2104_v0 }
 0x2c6   : > { %v2262_v62 = vmul.f32 %v3660_v63, %v2217_v24 }
 0x2c7   : > { %v1993_v28 = vpop.f32.mrf.mxu2  ;;  %v2219_v7 = vpop.f32.mrf.mxu0 }
 0x2c8   : > { %v2295_v1 = vadd.f32 %v3663_v58, %v2262_v62  ;;  %v1994_v61 = vadd.f32 %v1993_v28, %v1881_v60 }
 0x2c9   : > { %v1883_v11 = vpop.f32.mrf.mxu1  ;;  %v2106_v49 = vpop.f32.mrf.mxu3 }
 0x2ca   : > { %v2327_v41 = vmax.f32 %v2295_v1, 0.0  ;;  %v2107_v40 = vadd.f32 %v2106_v49, %v1994_v61  ;;  %v1884_v44 = vadd.f32 %v1883_v11, %v3634_v43 }
 0x2cc   : > { %2359 = vst [vmem:[%s3673_s25 + $0xd0] sm:$0xff] %v2327_v41  ;;  %v2220_v30 = vadd.f32 %v2219_v7, %v2107_v40 }
 0x2ce   : > { %v2263_v22 = vmul.f32 %v3660_v63, %v2220_v30 }
 0x2cf   : > { %v1996_v37 = vpop.f32.mrf.mxu2  ;;  %v2222_v26 = vpop.f32.mrf.mxu0 }
 0x2d0   : > { %v2296_v18 = vadd.f32 %v3663_v58, %v2263_v22  ;;  %v1997_v17 = vadd.f32 %v1996_v37, %v1884_v44 }
 0x2d1   : > { %v1886_v12 = vpop.f32.mrf.mxu1  ;;  %v2109_v3 = vpop.f32.mrf.mxu3 }
 0x2d2   : > { %v2328_v45 = vmax.f32 %v2296_v18, 0.0  ;;  %v2110_v42 = vadd.f32 %v2109_v3, %v1997_v17  ;;  %v1887_v39 = vadd.f32 %v1886_v12, %v3640_v56 }
 0x2d4   : > { %2360 = vst [vmem:[%s3673_s25 + $0xd8] sm:$0xff] %v2328_v45  ;;  %v2223_v38 = vadd.f32 %v2222_v26, %v2110_v42 }
 0x2d6   : > { %v2264_v14 = vmul.f32 %v3660_v63, %v2223_v38 }
 0x2d7   : > { %v1999_v54 = vpop.f32.mrf.mxu2  ;;  %v2225_v43 = vpop.f32.mrf.mxu0 }
 0x2d8   : > { %v2297_v23 = vadd.f32 %v3663_v58, %v2264_v14  ;;  %v2000_v47 = vadd.f32 %v1999_v54, %v1887_v39 }
 0x2d9   : > { %v1889_v8 = vpop.f32.mrf.mxu1  ;;  %v2112_v9 = vpop.f32.mrf.mxu3 }
 0x2da   : > { %v2329_v53 = vmax.f32 %v2297_v23, 0.0  ;;  %v2113_v50 = vadd.f32 %v2112_v9, %v2000_v47  ;;  %v1890_v20 = vadd.f32 %v1889_v8, %v3646_v25 }
 0x2dc   : > { %2361 = vst [vmem:[%s3673_s25 + $0xe0] sm:$0xff] %v2329_v53  ;;  %v2226_v21 = vadd.f32 %v2225_v43, %v2113_v50 }
 0x2de   : > { %v2265_v55 = vmul.f32 %v3660_v63, %v2226_v21 }
 0x2df   : > { %v2002_v34 = vpop.f32.mrf.mxu2  ;;  %v2228_v56 = vpop.f32.mrf.mxu0 }
 0x2e0   : > { %v2298_v16 = vadd.f32 %v3663_v58, %v2265_v55  ;;  %v2003_v2 = vadd.f32 %v2002_v34, %v1890_v20 }
 0x2e1   : > { %v2115_v10 = vpop.f32.mrf.mxu3  ;;  %v1892_v52 = vpop.f32.mrf.mxu1 }
 0x2e2   : > { %v2330_v27 = vmax.f32 %v2298_v16, 0.0  ;;  %v2116_v15 = vadd.f32 %v2115_v10, %v2003_v2  ;;  %v1893_v51 = vadd.f32 %v1892_v52, %v3651_v57 }
 0x2e4   : > { %2362 = vst [vmem:[%s3673_s25 + $0xe8] sm:$0xff] %v2330_v27  ;;  %v2229_v19 = vadd.f32 %v2228_v56, %v2116_v15 }
 0x2e6   : > { %v2266_v13 = vmul.f32 %v3660_v63, %v2229_v19 }
 0x2e7   : > { %v2005_v25 = vpop.f32.mrf.mxu2  ;;  %v2231_v36 = vpop.f32.mrf.mxu0 }
 0x2e8   : > { %v2299_v6 = vadd.f32 %v3663_v58, %v2266_v13  ;;  %v2006_v46 = vadd.f32 %v2005_v25, %v1893_v51 }
 0x2e9   : > { %v2118_v32 = vpop.f32.mrf.mxu3 }
 0x2ea   : > { %v2331_v5 = vmax.f32 %v2299_v6, 0.0  ;;  %v2119_v4 = vadd.f32 %v2118_v32, %v2006_v46 }
 0x2ec   : > { %2363 = vst [vmem:[%s3673_s25 + $0xf0] sm:$0xff] %v2331_v5  ;;  %v2232_v35 = vadd.f32 %v2231_v36, %v2119_v4 }
 0x2ee   : > { %v2267_v31 = vmul.f32 %v3660_v63, %v2232_v35 }
 0x2f0   : > { %v2300_v48 = vadd.f32 %v3663_v58, %v2267_v31 }
 0x2f2   : > { %v2332_v29 = vmax.f32 %v2300_v48, 0.0 }
 0x2f4   : > { %2364 = vst [vmem:[%s3673_s25 + $0xf8] sm:$0xff] %v2332_v29 }
 0x2f5 PF: > { %s13_s14 = sadd.s32 1, %s2755_s14   ;;  %s3854_s12 = smov %s2751_s13 }
 0x2f6   : > { %p10_p5 = scmp.ge.s32.totalorder %s13_s14, 4   ;;  %s3855_s13 = smov %s3857_s15 }
 0x2f8   :  { %12 = sbr.rel (!%p10_p5) target bundleno = 2 (0x2), region = 64 }

</bundles_post_ra>
